<compile_context>
chip_gen: v5e
topology: v5e:2x2
jax: 0.10.0
libtpu: 0.0.40
codegen_flags: <defaults>
</compile_context>

<pallas_src>
import functools
import math

import jax
import jax.numpy as jnp
from jax.experimental import pallas as pl
from jax.experimental.pallas import tpu as pltpu

# ---- "TransformerConfig" (small, synthetic) ----
D_MODEL = 32
N_HEADS = 4
D_HEAD = D_MODEL // N_HEADS
N_LAYERS = 2
D_HIDDEN = 4 * D_MODEL
SEQ = 8
BATCH = 2
CAUSAL = False

LN_EPS = 1e-5
RMS_EPS = 1e-6
# TODO(synk): exact eps / affine conventions of owl_vaes LayerNorm / QKNorm are
# assumed (LayerNorm eps=1e-5, RMSNorm eps=1e-6, learnable per-dim scales).
# TODO(synk): GELU uses the tanh approximation (EUP-friendly) instead of exact erf.


def _layernorm(x, gamma, beta):
    mu = jnp.mean(x, axis=-1, keepdims=True)
    xc = x - mu
    var = jnp.mean(xc * xc, axis=-1, keepdims=True)
    return xc * jax.lax.rsqrt(var + LN_EPS) * gamma + beta


def stacked_transformer_kernel(
    x_ref,
    agg_ref,                      # [D, D]  f32 block-diag head-averaging matrix
    ln1_g_ref, ln1_b_ref,         # [L, 1, D] f32
    w_qkv_ref, b_qkv_ref,         # [L, D, 3D] bf16 / [L, 1, 3D] f32
    qscale_ref, kscale_ref,       # [L, 1, D] f32 (1/sqrt(Dh) folded into qscale)
    w_out_ref, b_out_ref,         # [L, D, D] bf16 / [L, 1, D] f32
    ln2_g_ref, ln2_b_ref,         # [L, 1, D] f32
    w_fc1_ref, b_fc1_ref,         # [L, D, F] bf16 / [L, 1, F] f32
    w_fc2_ref, b_fc2_ref,         # [L, F, D] bf16 / [L, 1, D] f32
    o_ref,                        # [1, N, D] f32 output block
    o_buf_ref,                    # [N, D] f32 scratch: head-concat staging
    *, causal: bool, n_layers: int, n_heads: int,
):
    n_tok = x_ref.shape[1]
    d_model = x_ref.shape[2]
    d_head = d_model // n_heads

    agg = agg_ref[...]

    if causal:
        row = jax.lax.broadcasted_iota(jnp.int32, (n_tok, n_tok), 0)
        col = jax.lax.broadcasted_iota(jnp.int32, (n_tok, n_tok), 1)
        cmask = (col <= row).astype(jnp.float32)

    def rms_heads(t, scale):
        # Per-head RMSNorm on the flat [N, D] layout: one f32 matmul yields the
        # per-head mean-of-squares already broadcast across that head's lanes.
        ms = jnp.dot(t * t, agg, preferred_element_type=jnp.float32)
        return t * jax.lax.rsqrt(ms + RMS_EPS) * scale

    def layer(l, x):
        # ---------------- attention sub-block ----------------
        h = _layernorm(x, ln1_g_ref[l], ln1_b_ref[l])
        qkv = jnp.dot(h.astype(jnp.bfloat16), w_qkv_ref[l],
                      preferred_element_type=jnp.float32) + b_qkv_ref[l]

        q = rms_heads(qkv[:, 0 * d_model:1 * d_model], qscale_ref[l])
        k = rms_heads(qkv[:, 1 * d_model:2 * d_model], kscale_ref[l])
        v = qkv[:, 2 * d_model:3 * d_model]

        for hh in range(n_heads):
            lo = hh * d_head
            hi = lo + d_head
            qh = q[:, lo:hi].astype(jnp.bfloat16)
            kh = k[:, lo:hi].astype(jnp.bfloat16)
            vh = v[:, lo:hi].astype(jnp.bfloat16)
            s = jnp.einsum('nd,md->nm', qh, kh,
                           preferred_element_type=jnp.float32)
            # No row-max subtraction: post-QKNorm scores are bounded by
            # sqrt(Dh)*|q_scale|*|k_scale|, far from exp overflow.
            p = jnp.exp(s)
            if causal:
                p = p * cmask
            p = p * pl.reciprocal(jnp.sum(p, axis=-1, keepdims=True), approx=True)
            oh = jnp.einsum('nm,md->nd', p.astype(jnp.bfloat16), vh,
                            preferred_element_type=jnp.float32)
            o_buf_ref[:, lo:hi] = oh          # lane-slab assembly (head concat)

        # head-concat folded into ONE lane-dense output projection
        attn = jnp.dot(o_buf_ref[...].astype(jnp.bfloat16), w_out_ref[l],
                       preferred_element_type=jnp.float32) + b_out_ref[l]
        x = x + attn                                   # residual 1

        # ---------------- MLP sub-block ----------------
        h2 = _layernorm(x, ln2_g_ref[l], ln2_b_ref[l])
        m = jnp.dot(h2.astype(jnp.bfloat16), w_fc1_ref[l],
                    preferred_element_type=jnp.float32) + b_fc1_ref[l]
        m = jax.nn.gelu(m, approximate=True)
        m = jnp.dot(m.astype(jnp.bfloat16), w_fc2_ref[l],
                    preferred_element_type=jnp.float32) + b_fc2_ref[l]
        return x + m                                   # residual 2

    x0 = x_ref[0]
    x_final = jax.lax.fori_loop(0, n_layers, layer, x0, unroll=True)
    # NOTE: at real D, present the output as a lane-dense (B*N*D/128, 128) slab;
    # at D=32 the masked-store cost of the single final write is negligible.
    o_ref[0, :, :] = x_final


def stacked_transformer(x, params, *, n_heads=N_HEADS, causal=CAUSAL):
    """All layers fused; batch is a parallel grid axis (one [N, D] block per step)."""
    b, n, d = x.shape
    n_layers = params[1].shape[0]            # params[0] is the agg matrix [D, D]

    kernel = functools.partial(stacked_transformer_kernel,
                               causal=causal, n_layers=n_layers, n_heads=n_heads)

    def resident_spec(shape):
        nd = len(shape)
        return pl.BlockSpec(shape, lambda bb, _nd=nd: (0,) * _nd)

    in_specs = [pl.BlockSpec((1, n, d), lambda bb: (bb, 0, 0))] + \
               [resident_spec(p.shape) for p in params]

    out = pl.pallas_call(
        kernel,
        out_shape=jax.ShapeDtypeStruct((b, n, d), jnp.float32),
        grid=(b,),
        in_specs=in_specs,
        out_specs=pl.BlockSpec((1, n, d), lambda bb: (bb, 0, 0)),
        scratch_shapes=[pltpu.VMEM((n, d), jnp.float32)],
        compiler_params=pltpu.CompilerParams(
            dimension_semantics=("parallel",)),   # batch axis -> both TCs on v7x
    )(x, *params)
    return out


# ----------------------- parameters -----------------------
def init_layer_params_raw(key):
    """PyTorch-Linear-style uniform init; raw (un-reshaped) f32 parameters."""
    k_qkv, k_out, k_fc1, k_fc2 = jax.random.split(key, 4)

    def linear(k, fan_in, fan_out):
        kw, kb = jax.random.split(k)
        bound = 1.0 / math.sqrt(fan_in)
        w = jax.random.uniform(kw, (fan_in, fan_out), jnp.float32, -bound, bound)
        bb = jax.random.uniform(kb, (fan_out,), jnp.float32, -bound, bound)
        return w, bb

    wqkv, bqkv = linear(k_qkv, D_MODEL, 3 * D_MODEL)
    wout, bout = linear(k_out, D_MODEL, D_MODEL)
    wfc1, bfc1 = linear(k_fc1, D_MODEL, D_HIDDEN)
    wfc2, bfc2 = linear(k_fc2, D_HIDDEN, D_MODEL)
    return dict(
        wqkv=wqkv, bqkv=bqkv, wout=wout, bout=bout,
        wfc1=wfc1, bfc1=bfc1, wfc2=wfc2, bfc2=bfc2,
        ln1_g=jnp.ones((D_MODEL,), jnp.float32),
        ln1_b=jnp.zeros((D_MODEL,), jnp.float32),
        ln2_g=jnp.ones((D_MODEL,), jnp.float32),
        ln2_b=jnp.zeros((D_MODEL,), jnp.float32),
        q_scale=jnp.ones((D_HEAD,), jnp.float32),
        k_scale=jnp.ones((D_HEAD,), jnp.float32),
    )


def pack_params(raw_layers):
    """Host-side packing: lane-dense fused weights, bf16 MXU operands, stacked [L, ...]."""
    H, Dh, D, F = N_HEADS, D_HEAD, D_MODEL, D_HIDDEN

    # Block-diagonal per-head averaging matrix for flat-layout RMSNorm.
    agg = jnp.kron(jnp.eye(H, dtype=jnp.float32),
                   jnp.ones((Dh, Dh), jnp.float32)) / float(Dh)

    def stack(fn):
        return jnp.stack([fn(p) for p in raw_layers], axis=0)

    return [
        agg,
        stack(lambda p: p['ln1_g'].reshape(1, D)),
        stack(lambda p: p['ln1_b'].reshape(1, D)),
        stack(lambda p: p['wqkv'].astype(jnp.bfloat16)),                 # [D, 3D]
        stack(lambda p: p['bqkv'].reshape(1, 3 * D)),
        stack(lambda p: (jnp.tile(p['q_scale'], H) / math.sqrt(Dh)).reshape(1, D)),
        stack(lambda p: jnp.tile(p['k_scale'], H).reshape(1, D)),
        stack(lambda p: p['wout'].astype(jnp.bfloat16)),                 # [D, D]
        stack(lambda p: p['bout'].reshape(1, D)),
        stack(lambda p: p['ln2_g'].reshape(1, D)),
        stack(lambda p: p['ln2_b'].reshape(1, D)),
        stack(lambda p: p['wfc1'].astype(jnp.bfloat16)),                 # [D, F]
        stack(lambda p: p['bfc1'].reshape(1, F)),
        stack(lambda p: p['wfc2'].astype(jnp.bfloat16)),                 # [F, D]
        stack(lambda p: p['bfc2'].reshape(1, D)),
    ]


# ----------------------- plain-JAX reference -----------------------
def ref_forward(x, raw_layers, *, causal=CAUSAL):
    """Mirrors the PyTorch forward under the kernel's precision policy:
    bf16-rounded MXU operands (weights AND activations), f32 accumulation,
    tanh GELU, and 1/sqrt(Dh) applied to q before the bf16 cast (mathematically
    identical to SDPA's score scaling). Expected |kernel - ref| <~ 2e-2."""
    def ln(v, g, b):
        mu = jnp.mean(v, axis=-1, keepdims=True)
        var = jnp.mean((v - mu) ** 2, axis=-1, keepdims=True)
        return (v - mu) * jax.lax.rsqrt(var + LN_EPS) * g + b

    def rms(v, s):
        return v * jax.lax.rsqrt(jnp.mean(v * v, -1, keepdims=True) + RMS_EPS) * s

    def b16(t):
        return t.astype(jnp.bfloat16)

    B, N, D = x.shape
    H, Dh = N_HEADS, D_HEAD
    for p in raw_layers:
        h = ln(x, p['ln1_g'], p['ln1_b'])
        qkv = jnp.einsum('bnd,de->bne', b16(h), b16(p['wqkv']),
                         preferred_element_type=jnp.float32) + p['bqkv']
        q, k, v = jnp.split(qkv, 3, axis=-1)

        def heads(t):  # 'b n (h d) -> b h n d'
            return t.reshape(B, N, H, Dh).transpose(0, 2, 1, 3)

        q, k, v = heads(q), heads(k), heads(v)
        q = rms(q, p['q_scale']) * (1.0 / math.sqrt(Dh))
        k = rms(k, p['k_scale'])
        s = jnp.einsum('bhnd,bhmd->bhnm', b16(q), b16(k),
                       preferred_element_type=jnp.float32)
        if causal:
            mask = jnp.tril(jnp.ones((N, N), bool))
            s = jnp.where(mask, s, -jnp.inf)
        a = jax.nn.softmax(s, axis=-1)
        o = jnp.einsum('bhnm,bhmd->bhnd', b16(a), b16(v),
                       preferred_element_type=jnp.float32)
        o = o.transpose(0, 2, 1, 3).reshape(B, N, D)
        x = x + jnp.einsum('bnd,de->bne', b16(o), b16(p['wout']),
                           preferred_element_type=jnp.float32) + p['bout']
        h2 = ln(x, p['ln2_g'], p['ln2_b'])
        m = jnp.einsum('bnd,df->bnf', b16(h2), b16(p['wfc1']),
                       preferred_element_type=jnp.float32) + p['bfc1']
        m = jax.nn.gelu(m, approximate=True)
        x = x + jnp.einsum('bnf,fd->bnd', b16(m), b16(p['wfc2']),
                           preferred_element_type=jnp.float32) + p['bfc2']
    return x


if __name__ == "__main__":
    root = jax.random.PRNGKey(0)
    kx, kp = jax.random.split(root)

    x = jax.random.normal(kx, (BATCH, SEQ, D_MODEL), jnp.float32)
    raw_layers = [init_layer_params_raw(k) for k in jax.random.split(kp, N_LAYERS)]
    params = pack_params(raw_layers)

    out = stacked_transformer(x, params, causal=CAUSAL)
    out = jax.block_until_ready(out)

    assert out.shape == (BATCH, SEQ, D_MODEL)
    assert bool(jnp.all(jnp.isfinite(out)))

    ref = ref_forward(x, raw_layers, causal=CAUSAL)
    max_err = float(jnp.max(jnp.abs(out - ref)))
    # bf16 rounding-point differences + EUP approx reciprocal bound the mismatch.
    assert max_err < 5e-2, f"kernel vs reference mismatch: max abs err = {max_err}"

    print("KERNEL_OK")
</pallas_src>

<mosaic_0001>
module attributes {stable_mosaic.version = 11 : i64} {
  func.func @stacked_transformer_kernel(%arg0: i32, %arg1: memref<1x8x32xf32, #tpu.memory_space<vmem>>, %arg2: memref<32x32xf32, #tpu.memory_space<vmem>>, %arg3: memref<2x1x32xf32, #tpu.memory_space<vmem>>, %arg4: memref<2x1x32xf32, #tpu.memory_space<vmem>>, %arg5: memref<2x32x96xbf16, #tpu.memory_space<vmem>>, %arg6: memref<2x1x96xf32, #tpu.memory_space<vmem>>, %arg7: memref<2x1x32xf32, #tpu.memory_space<vmem>>, %arg8: memref<2x1x32xf32, #tpu.memory_space<vmem>>, %arg9: memref<2x32x32xbf16, #tpu.memory_space<vmem>>, %arg10: memref<2x1x32xf32, #tpu.memory_space<vmem>>, %arg11: memref<2x1x32xf32, #tpu.memory_space<vmem>>, %arg12: memref<2x1x32xf32, #tpu.memory_space<vmem>>, %arg13: memref<2x32x128xbf16, #tpu.memory_space<vmem>>, %arg14: memref<2x1x128xf32, #tpu.memory_space<vmem>>, %arg15: memref<2x128x32xbf16, #tpu.memory_space<vmem>>, %arg16: memref<2x1x32xf32, #tpu.memory_space<vmem>>, %arg17: memref<1x8x32xf32, #tpu.memory_space<vmem>>, %arg18: memref<8x32xf32, #tpu.memory_space<vmem>>) attributes {dimension_semantics = [#tpu.dimension_semantics<parallel>], iteration_bounds = array<i64: 2>, scalar_prefetch = 0 : i64, scratch_operands = 1 : i64, tpu.core_type = #tpu.core_type<tc>, window_params = [{transform_indices = @transform_0, window_bounds = array<i64: 1, 8, 32>}, {pipeline_mode = #tpu.pipeline_mode<synchronous>, transform_indices = @transform_1, window_bounds = array<i64: 32, 32>}, {pipeline_mode = #tpu.pipeline_mode<synchronous>, transform_indices = @transform_2, window_bounds = array<i64: 2, 1, 32>}, {pipeline_mode = #tpu.pipeline_mode<synchronous>, transform_indices = @transform_3, window_bounds = array<i64: 2, 1, 32>}, {pipeline_mode = #tpu.pipeline_mode<synchronous>, transform_indices = @transform_4, window_bounds = array<i64: 2, 32, 96>}, {pipeline_mode = #tpu.pipeline_mode<synchronous>, transform_indices = @transform_5, window_bounds = array<i64: 2, 1, 96>}, {pipeline_mode = #tpu.pipeline_mode<synchronous>, transform_indices = @transform_6, window_bounds = array<i64: 2, 1, 32>}, {pipeline_mode = #tpu.pipeline_mode<synchronous>, transform_indices = @transform_7, window_bounds = array<i64: 2, 1, 32>}, {pipeline_mode = #tpu.pipeline_mode<synchronous>, transform_indices = @transform_8, window_bounds = array<i64: 2, 32, 32>}, {pipeline_mode = #tpu.pipeline_mode<synchronous>, transform_indices = @transform_9, window_bounds = array<i64: 2, 1, 32>}, {pipeline_mode = #tpu.pipeline_mode<synchronous>, transform_indices = @transform_10, window_bounds = array<i64: 2, 1, 32>}, {pipeline_mode = #tpu.pipeline_mode<synchronous>, transform_indices = @transform_11, window_bounds = array<i64: 2, 1, 32>}, {pipeline_mode = #tpu.pipeline_mode<synchronous>, transform_indices = @transform_12, window_bounds = array<i64: 2, 32, 128>}, {pipeline_mode = #tpu.pipeline_mode<synchronous>, transform_indices = @transform_13, window_bounds = array<i64: 2, 1, 128>}, {pipeline_mode = #tpu.pipeline_mode<synchronous>, transform_indices = @transform_14, window_bounds = array<i64: 2, 128, 32>}, {pipeline_mode = #tpu.pipeline_mode<synchronous>, transform_indices = @transform_15, window_bounds = array<i64: 2, 1, 32>}, {transform_indices = @transform_16, window_bounds = array<i64: 1, 8, 32>}]} {
    %c0 = arith.constant 0 : index
    %c0_0 = arith.constant 0 : index
    %0 = vector.load %arg2[%c0, %c0_0] : memref<32x32xf32, #tpu.memory_space<vmem>>, vector<32x32xf32>
    %c0_1 = arith.constant 0 : index
    %c0_2 = arith.constant 0 : index
    %c0_3 = arith.constant 0 : index
    %1 = vector.load %arg1[%c0_1, %c0_2, %c0_3] : memref<1x8x32xf32, #tpu.memory_space<vmem>>, vector<1x8x32xf32>
    %2 = vector.shape_cast %1 : vector<1x8x32xf32> to vector<8x32xf32>
    %c0_i32 = arith.constant 0 : i32
    %3 = arith.index_cast %c0_i32 : i32 to index
    %c0_4 = arith.constant 0 : index
    %c0_5 = arith.constant 0 : index
    %4 = vector.load %arg3[%3, %c0_4, %c0_5] : memref<2x1x32xf32, #tpu.memory_space<vmem>>, vector<1x1x32xf32>
    %5 = vector.shape_cast %4 : vector<1x1x32xf32> to vector<1x32xf32>
    %6 = arith.index_cast %c0_i32 : i32 to index
    %c0_6 = arith.constant 0 : index
    %c0_7 = arith.constant 0 : index
    %7 = vector.load %arg4[%6, %c0_6, %c0_7] : memref<2x1x32xf32, #tpu.memory_space<vmem>>, vector<1x1x32xf32>
    %8 = vector.shape_cast %7 : vector<1x1x32xf32> to vector<1x32xf32>
    %cst = arith.constant dense<0.000000e+00> : vector<8xf32>
    %9 = vector.multi_reduction <add>, %2, %cst [1] : vector<8x32xf32> to vector<8xf32>
    %10 = vector.shape_cast %9 : vector<8xf32> to vector<8x1xf32>
    %cst_8 = arith.constant 3.200000e+01 : f32
    %11 = vector.broadcast %cst_8 : f32 to vector<8x1xf32>
    %12 = arith.divf %10, %11 : vector<8x1xf32>
    %13 = vector.broadcast %12 : vector<8x1xf32> to vector<8x32xf32>
    %14 = arith.subf %2, %13 : vector<8x32xf32>
    %15 = arith.mulf %14, %14 : vector<8x32xf32>
    %cst_9 = arith.constant dense<0.000000e+00> : vector<8xf32>
    %16 = vector.multi_reduction <add>, %15, %cst_9 [1] : vector<8x32xf32> to vector<8xf32>
    %17 = vector.shape_cast %16 : vector<8xf32> to vector<8x1xf32>
    %cst_10 = arith.constant 3.200000e+01 : f32
    %18 = vector.broadcast %cst_10 : f32 to vector<8x1xf32>
    %19 = arith.divf %17, %18 : vector<8x1xf32>
    %cst_11 = arith.constant 9.99999974E-6 : f32
    %20 = vector.broadcast %cst_11 : f32 to vector<8x1xf32>
    %21 = arith.addf %19, %20 : vector<8x1xf32>
    %22 = math.rsqrt %21 : vector<8x1xf32>
    %23 = vector.broadcast %22 : vector<8x1xf32> to vector<8x32xf32>
    %24 = arith.mulf %14, %23 : vector<8x32xf32>
    %25 = vector.broadcast %5 : vector<1x32xf32> to vector<8x32xf32>
    %26 = arith.mulf %24, %25 : vector<8x32xf32>
    %27 = vector.broadcast %8 : vector<1x32xf32> to vector<8x32xf32>
    %28 = arith.addf %26, %27 : vector<8x32xf32>
    %29 = arith.truncf %28 : vector<8x32xf32> to vector<8x32xbf16>
    %30 = arith.index_cast %c0_i32 : i32 to index
    %c0_12 = arith.constant 0 : index
    %c0_13 = arith.constant 0 : index
    %31 = vector.load %arg5[%30, %c0_12, %c0_13] : memref<2x32x96xbf16, #tpu.memory_space<vmem>>, vector<1x32x96xbf16>
    %32 = vector.shape_cast %31 : vector<1x32x96xbf16> to vector<32x96xbf16>
    %cst_14 = arith.constant dense<0.000000e+00> : vector<8x96xf32>
    %33 = tpu.matmul %29, %32, %cst_14 {dimension_numbers = #tpu.dot_dimension_numbers<[1], [0], [0], [1], [0, 0, 1, 1], [], []>} : vector<8x32xbf16>, vector<32x96xbf16>, vector<8x96xf32> -> vector<8x96xf32>
    %34 = arith.index_cast %c0_i32 : i32 to index
    %c0_15 = arith.constant 0 : index
    %c0_16 = arith.constant 0 : index
    %35 = vector.load %arg6[%34, %c0_15, %c0_16] : memref<2x1x96xf32, #tpu.memory_space<vmem>>, vector<1x1x96xf32>
    %36 = vector.shape_cast %35 : vector<1x1x96xf32> to vector<1x96xf32>
    %37 = vector.broadcast %36 : vector<1x96xf32> to vector<8x96xf32>
    %38 = arith.addf %33, %37 : vector<8x96xf32>
    %39 = vector.extract_strided_slice %38 {offsets = [0, 0], sizes = [8, 32], strides = [1, 1]} : vector<8x96xf32> to vector<8x32xf32>
    %40 = arith.index_cast %c0_i32 : i32 to index
    %c0_17 = arith.constant 0 : index
    %c0_18 = arith.constant 0 : index
    %41 = vector.load %arg7[%40, %c0_17, %c0_18] : memref<2x1x32xf32, #tpu.memory_space<vmem>>, vector<1x1x32xf32>
    %42 = vector.shape_cast %41 : vector<1x1x32xf32> to vector<1x32xf32>
    %43 = arith.mulf %39, %39 : vector<8x32xf32>
    %cst_19 = arith.constant dense<0.000000e+00> : vector<8x32xf32>
    %44 = tpu.matmul %43, %0, %cst_19 {dimension_numbers = #tpu.dot_dimension_numbers<[1], [0], [0], [1], [0, 0, 1, 1], [], []>} : vector<8x32xf32>, vector<32x32xf32>, vector<8x32xf32> -> vector<8x32xf32>
    %cst_20 = arith.constant 9.99999997E-7 : f32
    %45 = vector.broadcast %cst_20 : f32 to vector<8x32xf32>
    %46 = arith.addf %44, %45 : vector<8x32xf32>
    %47 = math.rsqrt %46 : vector<8x32xf32>
    %48 = arith.mulf %39, %47 : vector<8x32xf32>
    %49 = vector.broadcast %42 : vector<1x32xf32> to vector<8x32xf32>
    %50 = arith.mulf %48, %49 : vector<8x32xf32>
    %51 = vector.extract_strided_slice %38 {offsets = [0, 32], sizes = [8, 32], strides = [1, 1]} : vector<8x96xf32> to vector<8x32xf32>
    %52 = arith.index_cast %c0_i32 : i32 to index
    %c0_21 = arith.constant 0 : index
    %c0_22 = arith.constant 0 : index
    %53 = vector.load %arg8[%52, %c0_21, %c0_22] : memref<2x1x32xf32, #tpu.memory_space<vmem>>, vector<1x1x32xf32>
    %54 = vector.shape_cast %53 : vector<1x1x32xf32> to vector<1x32xf32>
    %55 = arith.mulf %51, %51 : vector<8x32xf32>
    %cst_23 = arith.constant dense<0.000000e+00> : vector<8x32xf32>
    %56 = tpu.matmul %55, %0, %cst_23 {dimension_numbers = #tpu.dot_dimension_numbers<[1], [0], [0], [1], [0, 0, 1, 1], [], []>} : vector<8x32xf32>, vector<32x32xf32>, vector<8x32xf32> -> vector<8x32xf32>
    %cst_24 = arith.constant 9.99999997E-7 : f32
    %57 = vector.broadcast %cst_24 : f32 to vector<8x32xf32>
    %58 = arith.addf %56, %57 : vector<8x32xf32>
    %59 = math.rsqrt %58 : vector<8x32xf32>
    %60 = arith.mulf %51, %59 : vector<8x32xf32>
    %61 = vector.broadcast %54 : vector<1x32xf32> to vector<8x32xf32>
    %62 = arith.mulf %60, %61 : vector<8x32xf32>
    %63 = vector.extract_strided_slice %38 {offsets = [0, 64], sizes = [8, 32], strides = [1, 1]} : vector<8x96xf32> to vector<8x32xf32>
    %64 = vector.extract_strided_slice %50 {offsets = [0, 0], sizes = [8, 8], strides = [1, 1]} : vector<8x32xf32> to vector<8x8xf32>
    %65 = arith.truncf %64 : vector<8x8xf32> to vector<8x8xbf16>
    %66 = vector.extract_strided_slice %62 {offsets = [0, 0], sizes = [8, 8], strides = [1, 1]} : vector<8x32xf32> to vector<8x8xf32>
    %67 = arith.truncf %66 : vector<8x8xf32> to vector<8x8xbf16>
    %68 = vector.extract_strided_slice %63 {offsets = [0, 0], sizes = [8, 8], strides = [1, 1]} : vector<8x32xf32> to vector<8x8xf32>
    %69 = arith.truncf %68 : vector<8x8xf32> to vector<8x8xbf16>
    "tpu.trace_start"() <{level = 10 : i32, message = "nd,md->nm"}> : () -> ()
    %cst_25 = arith.constant dense<0.000000e+00> : vector<8x8xf32>
    %70 = tpu.matmul %65, %67, %cst_25 {dimension_numbers = #tpu.dot_dimension_numbers<[1], [1], [0], [0], [0, 0, 1, 0], [], []>} : vector<8x8xbf16>, vector<8x8xbf16>, vector<8x8xf32> -> vector<8x8xf32>
    "tpu.trace_stop"() : () -> ()
    %71 = math.exp %70 : vector<8x8xf32>
    %cst_26 = arith.constant dense<0.000000e+00> : vector<8xf32>
    %72 = vector.multi_reduction <add>, %71, %cst_26 [1] : vector<8x8xf32> to vector<8xf32>
    %73 = vector.shape_cast %72 : vector<8xf32> to vector<8x1xf32>
    %74 = tpu.reciprocal %73 {approx = true} : vector<8x1xf32> -> vector<8x1xf32>
    %75 = vector.broadcast %74 : vector<8x1xf32> to vector<8x8xf32>
    %76 = arith.mulf %71, %75 : vector<8x8xf32>
    %77 = arith.truncf %76 : vector<8x8xf32> to vector<8x8xbf16>
    "tpu.trace_start"() <{level = 10 : i32, message = "nm,md->nd"}> : () -> ()
    %cst_27 = arith.constant dense<0.000000e+00> : vector<8x8xf32>
    %78 = tpu.matmul %77, %69, %cst_27 {dimension_numbers = #tpu.dot_dimension_numbers<[1], [0], [0], [1], [0, 0, 1, 1], [], []>} : vector<8x8xbf16>, vector<8x8xbf16>, vector<8x8xf32> -> vector<8x8xf32>
    "tpu.trace_stop"() : () -> ()
    %c0_28 = arith.constant 0 : index
    %c0_29 = arith.constant 0 : index
    %79 = vector.load %arg18[%c0_28, %c0_29] : memref<8x32xf32, #tpu.memory_space<vmem>>, vector<8x8xf32>
    tpu.vector_store %arg18[%c0_28, %c0_29], %78 {strides = array<i32>} : memref<8x32xf32, #tpu.memory_space<vmem>>, vector<8x8xf32>,
    %80 = vector.extract_strided_slice %50 {offsets = [0, 8], sizes = [8, 8], strides = [1, 1]} : vector<8x32xf32> to vector<8x8xf32>
    %81 = arith.truncf %80 : vector<8x8xf32> to vector<8x8xbf16>
    %82 = vector.extract_strided_slice %62 {offsets = [0, 8], sizes = [8, 8], strides = [1, 1]} : vector<8x32xf32> to vector<8x8xf32>
    %83 = arith.truncf %82 : vector<8x8xf32> to vector<8x8xbf16>
    %84 = vector.extract_strided_slice %63 {offsets = [0, 8], sizes = [8, 8], strides = [1, 1]} : vector<8x32xf32> to vector<8x8xf32>
    %85 = arith.truncf %84 : vector<8x8xf32> to vector<8x8xbf16>
    "tpu.trace_start"() <{level = 10 : i32, message = "nd,md->nm"}> : () -> ()
    %cst_30 = arith.constant dense<0.000000e+00> : vector<8x8xf32>
    %86 = tpu.matmul %81, %83, %cst_30 {dimension_numbers = #tpu.dot_dimension_numbers<[1], [1], [0], [0], [0, 0, 1, 0], [], []>} : vector<8x8xbf16>, vector<8x8xbf16>, vector<8x8xf32> -> vector<8x8xf32>
    "tpu.trace_stop"() : () -> ()
    %87 = math.exp %86 : vector<8x8xf32>
    %cst_31 = arith.constant dense<0.000000e+00> : vector<8xf32>
    %88 = vector.multi_reduction <add>, %87, %cst_31 [1] : vector<8x8xf32> to vector<8xf32>
    %89 = vector.shape_cast %88 : vector<8xf32> to vector<8x1xf32>
    %90 = tpu.reciprocal %89 {approx = true} : vector<8x1xf32> -> vector<8x1xf32>
    %91 = vector.broadcast %90 : vector<8x1xf32> to vector<8x8xf32>
    %92 = arith.mulf %87, %91 : vector<8x8xf32>
    %93 = arith.truncf %92 : vector<8x8xf32> to vector<8x8xbf16>
    "tpu.trace_start"() <{level = 10 : i32, message = "nm,md->nd"}> : () -> ()
    %cst_32 = arith.constant dense<0.000000e+00> : vector<8x8xf32>
    %94 = tpu.matmul %93, %85, %cst_32 {dimension_numbers = #tpu.dot_dimension_numbers<[1], [0], [0], [1], [0, 0, 1, 1], [], []>} : vector<8x8xbf16>, vector<8x8xbf16>, vector<8x8xf32> -> vector<8x8xf32>
    "tpu.trace_stop"() : () -> ()
    %c0_33 = arith.constant 0 : index
    %c8 = arith.constant 8 : index
    %95 = vector.load %arg18[%c0_33, %c8] : memref<8x32xf32, #tpu.memory_space<vmem>>, vector<8x8xf32>
    tpu.vector_store %arg18[%c0_33, %c8], %94 {strides = array<i32>} : memref<8x32xf32, #tpu.memory_space<vmem>>, vector<8x8xf32>,
    %96 = vector.extract_strided_slice %50 {offsets = [0, 16], sizes = [8, 8], strides = [1, 1]} : vector<8x32xf32> to vector<8x8xf32>
    %97 = arith.truncf %96 : vector<8x8xf32> to vector<8x8xbf16>
    %98 = vector.extract_strided_slice %62 {offsets = [0, 16], sizes = [8, 8], strides = [1, 1]} : vector<8x32xf32> to vector<8x8xf32>
    %99 = arith.truncf %98 : vector<8x8xf32> to vector<8x8xbf16>
    %100 = vector.extract_strided_slice %63 {offsets = [0, 16], sizes = [8, 8], strides = [1, 1]} : vector<8x32xf32> to vector<8x8xf32>
    %101 = arith.truncf %100 : vector<8x8xf32> to vector<8x8xbf16>
    "tpu.trace_start"() <{level = 10 : i32, message = "nd,md->nm"}> : () -> ()
    %cst_34 = arith.constant dense<0.000000e+00> : vector<8x8xf32>
    %102 = tpu.matmul %97, %99, %cst_34 {dimension_numbers = #tpu.dot_dimension_numbers<[1], [1], [0], [0], [0, 0, 1, 0], [], []>} : vector<8x8xbf16>, vector<8x8xbf16>, vector<8x8xf32> -> vector<8x8xf32>
    "tpu.trace_stop"() : () -> ()
    %103 = math.exp %102 : vector<8x8xf32>
    %cst_35 = arith.constant dense<0.000000e+00> : vector<8xf32>
    %104 = vector.multi_reduction <add>, %103, %cst_35 [1] : vector<8x8xf32> to vector<8xf32>
    %105 = vector.shape_cast %104 : vector<8xf32> to vector<8x1xf32>
    %106 = tpu.reciprocal %105 {approx = true} : vector<8x1xf32> -> vector<8x1xf32>
    %107 = vector.broadcast %106 : vector<8x1xf32> to vector<8x8xf32>
    %108 = arith.mulf %103, %107 : vector<8x8xf32>
    %109 = arith.truncf %108 : vector<8x8xf32> to vector<8x8xbf16>
    "tpu.trace_start"() <{level = 10 : i32, message = "nm,md->nd"}> : () -> ()
    %cst_36 = arith.constant dense<0.000000e+00> : vector<8x8xf32>
    %110 = tpu.matmul %109, %101, %cst_36 {dimension_numbers = #tpu.dot_dimension_numbers<[1], [0], [0], [1], [0, 0, 1, 1], [], []>} : vector<8x8xbf16>, vector<8x8xbf16>, vector<8x8xf32> -> vector<8x8xf32>
    "tpu.trace_stop"() : () -> ()
    %c0_37 = arith.constant 0 : index
    %c16 = arith.constant 16 : index
    %111 = vector.load %arg18[%c0_37, %c16] : memref<8x32xf32, #tpu.memory_space<vmem>>, vector<8x8xf32>
    tpu.vector_store %arg18[%c0_37, %c16], %110 {strides = array<i32>} : memref<8x32xf32, #tpu.memory_space<vmem>>, vector<8x8xf32>,
    %112 = vector.extract_strided_slice %50 {offsets = [0, 24], sizes = [8, 8], strides = [1, 1]} : vector<8x32xf32> to vector<8x8xf32>
    %113 = arith.truncf %112 : vector<8x8xf32> to vector<8x8xbf16>
    %114 = vector.extract_strided_slice %62 {offsets = [0, 24], sizes = [8, 8], strides = [1, 1]} : vector<8x32xf32> to vector<8x8xf32>
    %115 = arith.truncf %114 : vector<8x8xf32> to vector<8x8xbf16>
    %116 = vector.extract_strided_slice %63 {offsets = [0, 24], sizes = [8, 8], strides = [1, 1]} : vector<8x32xf32> to vector<8x8xf32>
    %117 = arith.truncf %116 : vector<8x8xf32> to vector<8x8xbf16>
    "tpu.trace_start"() <{level = 10 : i32, message = "nd,md->nm"}> : () -> ()
    %cst_38 = arith.constant dense<0.000000e+00> : vector<8x8xf32>
    %118 = tpu.matmul %113, %115, %cst_38 {dimension_numbers = #tpu.dot_dimension_numbers<[1], [1], [0], [0], [0, 0, 1, 0], [], []>} : vector<8x8xbf16>, vector<8x8xbf16>, vector<8x8xf32> -> vector<8x8xf32>
    "tpu.trace_stop"() : () -> ()
    %119 = math.exp %118 : vector<8x8xf32>
    %cst_39 = arith.constant dense<0.000000e+00> : vector<8xf32>
    %120 = vector.multi_reduction <add>, %119, %cst_39 [1] : vector<8x8xf32> to vector<8xf32>
    %121 = vector.shape_cast %120 : vector<8xf32> to vector<8x1xf32>
    %122 = tpu.reciprocal %121 {approx = true} : vector<8x1xf32> -> vector<8x1xf32>
    %123 = vector.broadcast %122 : vector<8x1xf32> to vector<8x8xf32>
    %124 = arith.mulf %119, %123 : vector<8x8xf32>
    %125 = arith.truncf %124 : vector<8x8xf32> to vector<8x8xbf16>
    "tpu.trace_start"() <{level = 10 : i32, message = "nm,md->nd"}> : () -> ()
    %cst_40 = arith.constant dense<0.000000e+00> : vector<8x8xf32>
    %126 = tpu.matmul %125, %117, %cst_40 {dimension_numbers = #tpu.dot_dimension_numbers<[1], [0], [0], [1], [0, 0, 1, 1], [], []>} : vector<8x8xbf16>, vector<8x8xbf16>, vector<8x8xf32> -> vector<8x8xf32>
    "tpu.trace_stop"() : () -> ()
    %c0_41 = arith.constant 0 : index
    %c24 = arith.constant 24 : index
    %127 = vector.load %arg18[%c0_41, %c24] : memref<8x32xf32, #tpu.memory_space<vmem>>, vector<8x8xf32>
    tpu.vector_store %arg18[%c0_41, %c24], %126 {strides = array<i32>} : memref<8x32xf32, #tpu.memory_space<vmem>>, vector<8x8xf32>,
    %c0_42 = arith.constant 0 : index
    %c0_43 = arith.constant 0 : index
    %128 = vector.load %arg18[%c0_42, %c0_43] : memref<8x32xf32, #tpu.memory_space<vmem>>, vector<8x32xf32>
    %129 = arith.truncf %128 : vector<8x32xf32> to vector<8x32xbf16>
    %130 = arith.index_cast %c0_i32 : i32 to index
    %c0_44 = arith.constant 0 : index
    %c0_45 = arith.constant 0 : index
    %131 = vector.load %arg9[%130, %c0_44, %c0_45] : memref<2x32x32xbf16, #tpu.memory_space<vmem>>, vector<1x32x32xbf16>
    %132 = vector.shape_cast %131 : vector<1x32x32xbf16> to vector<32x32xbf16>
    %cst_46 = arith.constant dense<0.000000e+00> : vector<8x32xf32>
    %133 = tpu.matmul %129, %132, %cst_46 {dimension_numbers = #tpu.dot_dimension_numbers<[1], [0], [0], [1], [0, 0, 1, 1], [], []>} : vector<8x32xbf16>, vector<32x32xbf16>, vector<8x32xf32> -> vector<8x32xf32>
    %134 = arith.index_cast %c0_i32 : i32 to index
    %c0_47 = arith.constant 0 : index
    %c0_48 = arith.constant 0 : index
    %135 = vector.load %arg10[%134, %c0_47, %c0_48] : memref<2x1x32xf32, #tpu.memory_space<vmem>>, vector<1x1x32xf32>
    %136 = vector.shape_cast %135 : vector<1x1x32xf32> to vector<1x32xf32>
    %137 = vector.broadcast %136 : vector<1x32xf32> to vector<8x32xf32>
    %138 = arith.addf %133, %137 : vector<8x32xf32>
    %139 = arith.addf %2, %138 : vector<8x32xf32>
    %140 = arith.index_cast %c0_i32 : i32 to index
    %c0_49 = arith.constant 0 : index
    %c0_50 = arith.constant 0 : index
    %141 = vector.load %arg11[%140, %c0_49, %c0_50] : memref<2x1x32xf32, #tpu.memory_space<vmem>>, vector<1x1x32xf32>
    %142 = vector.shape_cast %141 : vector<1x1x32xf32> to vector<1x32xf32>
    %143 = arith.index_cast %c0_i32 : i32 to index
    %c0_51 = arith.constant 0 : index
    %c0_52 = arith.constant 0 : index
    %144 = vector.load %arg12[%143, %c0_51, %c0_52] : memref<2x1x32xf32, #tpu.memory_space<vmem>>, vector<1x1x32xf32>
    %145 = vector.shape_cast %144 : vector<1x1x32xf32> to vector<1x32xf32>
    %cst_53 = arith.constant dense<0.000000e+00> : vector<8xf32>
    %146 = vector.multi_reduction <add>, %139, %cst_53 [1] : vector<8x32xf32> to vector<8xf32>
    %147 = vector.shape_cast %146 : vector<8xf32> to vector<8x1xf32>
    %cst_54 = arith.constant 3.200000e+01 : f32
    %148 = vector.broadcast %cst_54 : f32 to vector<8x1xf32>
    %149 = arith.divf %147, %148 : vector<8x1xf32>
    %150 = vector.broadcast %149 : vector<8x1xf32> to vector<8x32xf32>
    %151 = arith.subf %139, %150 : vector<8x32xf32>
    %152 = arith.mulf %151, %151 : vector<8x32xf32>
    %cst_55 = arith.constant dense<0.000000e+00> : vector<8xf32>
    %153 = vector.multi_reduction <add>, %152, %cst_55 [1] : vector<8x32xf32> to vector<8xf32>
    %154 = vector.shape_cast %153 : vector<8xf32> to vector<8x1xf32>
    %cst_56 = arith.constant 3.200000e+01 : f32
    %155 = vector.broadcast %cst_56 : f32 to vector<8x1xf32>
    %156 = arith.divf %154, %155 : vector<8x1xf32>
    %cst_57 = arith.constant 9.99999974E-6 : f32
    %157 = vector.broadcast %cst_57 : f32 to vector<8x1xf32>
    %158 = arith.addf %156, %157 : vector<8x1xf32>
    %159 = math.rsqrt %158 : vector<8x1xf32>
    %160 = vector.broadcast %159 : vector<8x1xf32> to vector<8x32xf32>
    %161 = arith.mulf %151, %160 : vector<8x32xf32>
    %162 = vector.broadcast %142 : vector<1x32xf32> to vector<8x32xf32>
    %163 = arith.mulf %161, %162 : vector<8x32xf32>
    %164 = vector.broadcast %145 : vector<1x32xf32> to vector<8x32xf32>
    %165 = arith.addf %163, %164 : vector<8x32xf32>
    %166 = arith.truncf %165 : vector<8x32xf32> to vector<8x32xbf16>
    %167 = arith.index_cast %c0_i32 : i32 to index
    %c0_58 = arith.constant 0 : index
    %c0_59 = arith.constant 0 : index
    %168 = vector.load %arg13[%167, %c0_58, %c0_59] : memref<2x32x128xbf16, #tpu.memory_space<vmem>>, vector<1x32x128xbf16>
    %169 = vector.shape_cast %168 : vector<1x32x128xbf16> to vector<32x128xbf16>
    %cst_60 = arith.constant dense<0.000000e+00> : vector<8x128xf32>
    %170 = tpu.matmul %166, %169, %cst_60 {dimension_numbers = #tpu.dot_dimension_numbers<[1], [0], [0], [1], [0, 0, 1, 1], [], []>} : vector<8x32xbf16>, vector<32x128xbf16>, vector<8x128xf32> -> vector<8x128xf32>
    %171 = arith.index_cast %c0_i32 : i32 to index
    %c0_61 = arith.constant 0 : index
    %c0_62 = arith.constant 0 : index
    %172 = vector.load %arg14[%171, %c0_61, %c0_62] : memref<2x1x128xf32, #tpu.memory_space<vmem>>, vector<1x1x128xf32>
    %173 = vector.shape_cast %172 : vector<1x1x128xf32> to vector<1x128xf32>
    %174 = vector.broadcast %173 : vector<1x128xf32> to vector<8x128xf32>
    %175 = arith.addf %170, %174 : vector<8x128xf32>
    %176 = arith.mulf %175, %175 : vector<8x128xf32>
    %177 = arith.mulf %175, %176 : vector<8x128xf32>
    %cst_63 = arith.constant 4.471500e-02 : f32
    %178 = vector.broadcast %cst_63 : f32 to vector<8x128xf32>
    %179 = arith.mulf %178, %177 : vector<8x128xf32>
    %180 = arith.addf %175, %179 : vector<8x128xf32>
    %cst_64 = arith.constant 0.797884583 : f32
    %181 = vector.broadcast %cst_64 : f32 to vector<8x128xf32>
    %182 = arith.mulf %181, %180 : vector<8x128xf32>
    %183 = math.tanh %182 : vector<8x128xf32>
    %cst_65 = arith.constant 1.000000e+00 : f32
    %184 = vector.broadcast %cst_65 : f32 to vector<8x128xf32>
    %185 = arith.addf %184, %183 : vector<8x128xf32>
    %cst_66 = arith.constant 5.000000e-01 : f32
    %186 = vector.broadcast %cst_66 : f32 to vector<8x128xf32>
    %187 = arith.mulf %186, %185 : vector<8x128xf32>
    %188 = arith.mulf %175, %187 : vector<8x128xf32>
    %189 = arith.truncf %188 : vector<8x128xf32> to vector<8x128xbf16>
    %190 = arith.index_cast %c0_i32 : i32 to index
    %c0_67 = arith.constant 0 : index
    %c0_68 = arith.constant 0 : index
    %191 = vector.load %arg15[%190, %c0_67, %c0_68] : memref<2x128x32xbf16, #tpu.memory_space<vmem>>, vector<1x128x32xbf16>
    %192 = vector.shape_cast %191 : vector<1x128x32xbf16> to vector<128x32xbf16>
    %cst_69 = arith.constant dense<0.000000e+00> : vector<8x32xf32>
    %193 = tpu.matmul %189, %192, %cst_69 {dimension_numbers = #tpu.dot_dimension_numbers<[1], [0], [0], [1], [0, 0, 1, 1], [], []>} : vector<8x128xbf16>, vector<128x32xbf16>, vector<8x32xf32> -> vector<8x32xf32>
    %194 = arith.index_cast %c0_i32 : i32 to index
    %c0_70 = arith.constant 0 : index
    %c0_71 = arith.constant 0 : index
    %195 = vector.load %arg16[%194, %c0_70, %c0_71] : memref<2x1x32xf32, #tpu.memory_space<vmem>>, vector<1x1x32xf32>
    %196 = vector.shape_cast %195 : vector<1x1x32xf32> to vector<1x32xf32>
    %197 = vector.broadcast %196 : vector<1x32xf32> to vector<8x32xf32>
    %198 = arith.addf %193, %197 : vector<8x32xf32>
    %199 = arith.addf %139, %198 : vector<8x32xf32>
    %c1_i32 = arith.constant 1 : i32
    %200 = arith.index_cast %c1_i32 : i32 to index
    %c0_72 = arith.constant 0 : index
    %c0_73 = arith.constant 0 : index
    %201 = vector.load %arg3[%200, %c0_72, %c0_73] : memref<2x1x32xf32, #tpu.memory_space<vmem>>, vector<1x1x32xf32>
    %202 = vector.shape_cast %201 : vector<1x1x32xf32> to vector<1x32xf32>
    %203 = arith.index_cast %c1_i32 : i32 to index
    %c0_74 = arith.constant 0 : index
    %c0_75 = arith.constant 0 : index
    %204 = vector.load %arg4[%203, %c0_74, %c0_75] : memref<2x1x32xf32, #tpu.memory_space<vmem>>, vector<1x1x32xf32>
    %205 = vector.shape_cast %204 : vector<1x1x32xf32> to vector<1x32xf32>
    %cst_76 = arith.constant dense<0.000000e+00> : vector<8xf32>
    %206 = vector.multi_reduction <add>, %199, %cst_76 [1] : vector<8x32xf32> to vector<8xf32>
    %207 = vector.shape_cast %206 : vector<8xf32> to vector<8x1xf32>
    %cst_77 = arith.constant 3.200000e+01 : f32
    %208 = vector.broadcast %cst_77 : f32 to vector<8x1xf32>
    %209 = arith.divf %207, %208 : vector<8x1xf32>
    %210 = vector.broadcast %209 : vector<8x1xf32> to vector<8x32xf32>
    %211 = arith.subf %199, %210 : vector<8x32xf32>
    %212 = arith.mulf %211, %211 : vector<8x32xf32>
    %cst_78 = arith.constant dense<0.000000e+00> : vector<8xf32>
    %213 = vector.multi_reduction <add>, %212, %cst_78 [1] : vector<8x32xf32> to vector<8xf32>
    %214 = vector.shape_cast %213 : vector<8xf32> to vector<8x1xf32>
    %cst_79 = arith.constant 3.200000e+01 : f32
    %215 = vector.broadcast %cst_79 : f32 to vector<8x1xf32>
    %216 = arith.divf %214, %215 : vector<8x1xf32>
    %cst_80 = arith.constant 9.99999974E-6 : f32
    %217 = vector.broadcast %cst_80 : f32 to vector<8x1xf32>
    %218 = arith.addf %216, %217 : vector<8x1xf32>
    %219 = math.rsqrt %218 : vector<8x1xf32>
    %220 = vector.broadcast %219 : vector<8x1xf32> to vector<8x32xf32>
    %221 = arith.mulf %211, %220 : vector<8x32xf32>
    %222 = vector.broadcast %202 : vector<1x32xf32> to vector<8x32xf32>
    %223 = arith.mulf %221, %222 : vector<8x32xf32>
    %224 = vector.broadcast %205 : vector<1x32xf32> to vector<8x32xf32>
    %225 = arith.addf %223, %224 : vector<8x32xf32>
    %226 = arith.truncf %225 : vector<8x32xf32> to vector<8x32xbf16>
    %227 = arith.index_cast %c1_i32 : i32 to index
    %c0_81 = arith.constant 0 : index
    %c0_82 = arith.constant 0 : index
    %228 = vector.load %arg5[%227, %c0_81, %c0_82] : memref<2x32x96xbf16, #tpu.memory_space<vmem>>, vector<1x32x96xbf16>
    %229 = vector.shape_cast %228 : vector<1x32x96xbf16> to vector<32x96xbf16>
    %cst_83 = arith.constant dense<0.000000e+00> : vector<8x96xf32>
    %230 = tpu.matmul %226, %229, %cst_83 {dimension_numbers = #tpu.dot_dimension_numbers<[1], [0], [0], [1], [0, 0, 1, 1], [], []>} : vector<8x32xbf16>, vector<32x96xbf16>, vector<8x96xf32> -> vector<8x96xf32>
    %231 = arith.index_cast %c1_i32 : i32 to index
    %c0_84 = arith.constant 0 : index
    %c0_85 = arith.constant 0 : index
    %232 = vector.load %arg6[%231, %c0_84, %c0_85] : memref<2x1x96xf32, #tpu.memory_space<vmem>>, vector<1x1x96xf32>
    %233 = vector.shape_cast %232 : vector<1x1x96xf32> to vector<1x96xf32>
    %234 = vector.broadcast %233 : vector<1x96xf32> to vector<8x96xf32>
    %235 = arith.addf %230, %234 : vector<8x96xf32>
    %236 = vector.extract_strided_slice %235 {offsets = [0, 0], sizes = [8, 32], strides = [1, 1]} : vector<8x96xf32> to vector<8x32xf32>
    %237 = arith.index_cast %c1_i32 : i32 to index
    %c0_86 = arith.constant 0 : index
    %c0_87 = arith.constant 0 : index
    %238 = vector.load %arg7[%237, %c0_86, %c0_87] : memref<2x1x32xf32, #tpu.memory_space<vmem>>, vector<1x1x32xf32>
    %239 = vector.shape_cast %238 : vector<1x1x32xf32> to vector<1x32xf32>
    %240 = arith.mulf %236, %236 : vector<8x32xf32>
    %cst_88 = arith.constant dense<0.000000e+00> : vector<8x32xf32>
    %241 = tpu.matmul %240, %0, %cst_88 {dimension_numbers = #tpu.dot_dimension_numbers<[1], [0], [0], [1], [0, 0, 1, 1], [], []>} : vector<8x32xf32>, vector<32x32xf32>, vector<8x32xf32> -> vector<8x32xf32>
    %cst_89 = arith.constant 9.99999997E-7 : f32
    %242 = vector.broadcast %cst_89 : f32 to vector<8x32xf32>
    %243 = arith.addf %241, %242 : vector<8x32xf32>
    %244 = math.rsqrt %243 : vector<8x32xf32>
    %245 = arith.mulf %236, %244 : vector<8x32xf32>
    %246 = vector.broadcast %239 : vector<1x32xf32> to vector<8x32xf32>
    %247 = arith.mulf %245, %246 : vector<8x32xf32>
    %248 = vector.extract_strided_slice %235 {offsets = [0, 32], sizes = [8, 32], strides = [1, 1]} : vector<8x96xf32> to vector<8x32xf32>
    %249 = arith.index_cast %c1_i32 : i32 to index
    %c0_90 = arith.constant 0 : index
    %c0_91 = arith.constant 0 : index
    %250 = vector.load %arg8[%249, %c0_90, %c0_91] : memref<2x1x32xf32, #tpu.memory_space<vmem>>, vector<1x1x32xf32>
    %251 = vector.shape_cast %250 : vector<1x1x32xf32> to vector<1x32xf32>
    %252 = arith.mulf %248, %248 : vector<8x32xf32>
    %cst_92 = arith.constant dense<0.000000e+00> : vector<8x32xf32>
    %253 = tpu.matmul %252, %0, %cst_92 {dimension_numbers = #tpu.dot_dimension_numbers<[1], [0], [0], [1], [0, 0, 1, 1], [], []>} : vector<8x32xf32>, vector<32x32xf32>, vector<8x32xf32> -> vector<8x32xf32>
    %cst_93 = arith.constant 9.99999997E-7 : f32
    %254 = vector.broadcast %cst_93 : f32 to vector<8x32xf32>
    %255 = arith.addf %253, %254 : vector<8x32xf32>
    %256 = math.rsqrt %255 : vector<8x32xf32>
    %257 = arith.mulf %248, %256 : vector<8x32xf32>
    %258 = vector.broadcast %251 : vector<1x32xf32> to vector<8x32xf32>
    %259 = arith.mulf %257, %258 : vector<8x32xf32>
    %260 = vector.extract_strided_slice %235 {offsets = [0, 64], sizes = [8, 32], strides = [1, 1]} : vector<8x96xf32> to vector<8x32xf32>
    %261 = vector.extract_strided_slice %247 {offsets = [0, 0], sizes = [8, 8], strides = [1, 1]} : vector<8x32xf32> to vector<8x8xf32>
    %262 = arith.truncf %261 : vector<8x8xf32> to vector<8x8xbf16>
    %263 = vector.extract_strided_slice %259 {offsets = [0, 0], sizes = [8, 8], strides = [1, 1]} : vector<8x32xf32> to vector<8x8xf32>
    %264 = arith.truncf %263 : vector<8x8xf32> to vector<8x8xbf16>
    %265 = vector.extract_strided_slice %260 {offsets = [0, 0], sizes = [8, 8], strides = [1, 1]} : vector<8x32xf32> to vector<8x8xf32>
    %266 = arith.truncf %265 : vector<8x8xf32> to vector<8x8xbf16>
    "tpu.trace_start"() <{level = 10 : i32, message = "nd,md->nm"}> : () -> ()
    %cst_94 = arith.constant dense<0.000000e+00> : vector<8x8xf32>
    %267 = tpu.matmul %262, %264, %cst_94 {dimension_numbers = #tpu.dot_dimension_numbers<[1], [1], [0], [0], [0, 0, 1, 0], [], []>} : vector<8x8xbf16>, vector<8x8xbf16>, vector<8x8xf32> -> vector<8x8xf32>
    "tpu.trace_stop"() : () -> ()
    %268 = math.exp %267 : vector<8x8xf32>
    %cst_95 = arith.constant dense<0.000000e+00> : vector<8xf32>
    %269 = vector.multi_reduction <add>, %268, %cst_95 [1] : vector<8x8xf32> to vector<8xf32>
    %270 = vector.shape_cast %269 : vector<8xf32> to vector<8x1xf32>
    %271 = tpu.reciprocal %270 {approx = true} : vector<8x1xf32> -> vector<8x1xf32>
    %272 = vector.broadcast %271 : vector<8x1xf32> to vector<8x8xf32>
    %273 = arith.mulf %268, %272 : vector<8x8xf32>
    %274 = arith.truncf %273 : vector<8x8xf32> to vector<8x8xbf16>
    "tpu.trace_start"() <{level = 10 : i32, message = "nm,md->nd"}> : () -> ()
    %cst_96 = arith.constant dense<0.000000e+00> : vector<8x8xf32>
    %275 = tpu.matmul %274, %266, %cst_96 {dimension_numbers = #tpu.dot_dimension_numbers<[1], [0], [0], [1], [0, 0, 1, 1], [], []>} : vector<8x8xbf16>, vector<8x8xbf16>, vector<8x8xf32> -> vector<8x8xf32>
    "tpu.trace_stop"() : () -> ()
    %c0_97 = arith.constant 0 : index
    %c0_98 = arith.constant 0 : index
    %276 = vector.load %arg18[%c0_97, %c0_98] : memref<8x32xf32, #tpu.memory_space<vmem>>, vector<8x8xf32>
    tpu.vector_store %arg18[%c0_97, %c0_98], %275 {strides = array<i32>} : memref<8x32xf32, #tpu.memory_space<vmem>>, vector<8x8xf32>,
    %277 = vector.extract_strided_slice %247 {offsets = [0, 8], sizes = [8, 8], strides = [1, 1]} : vector<8x32xf32> to vector<8x8xf32>
    %278 = arith.truncf %277 : vector<8x8xf32> to vector<8x8xbf16>
    %279 = vector.extract_strided_slice %259 {offsets = [0, 8], sizes = [8, 8], strides = [1, 1]} : vector<8x32xf32> to vector<8x8xf32>
    %280 = arith.truncf %279 : vector<8x8xf32> to vector<8x8xbf16>
    %281 = vector.extract_strided_slice %260 {offsets = [0, 8], sizes = [8, 8], strides = [1, 1]} : vector<8x32xf32> to vector<8x8xf32>
    %282 = arith.truncf %281 : vector<8x8xf32> to vector<8x8xbf16>
    "tpu.trace_start"() <{level = 10 : i32, message = "nd,md->nm"}> : () -> ()
    %cst_99 = arith.constant dense<0.000000e+00> : vector<8x8xf32>
    %283 = tpu.matmul %278, %280, %cst_99 {dimension_numbers = #tpu.dot_dimension_numbers<[1], [1], [0], [0], [0, 0, 1, 0], [], []>} : vector<8x8xbf16>, vector<8x8xbf16>, vector<8x8xf32> -> vector<8x8xf32>
    "tpu.trace_stop"() : () -> ()
    %284 = math.exp %283 : vector<8x8xf32>
    %cst_100 = arith.constant dense<0.000000e+00> : vector<8xf32>
    %285 = vector.multi_reduction <add>, %284, %cst_100 [1] : vector<8x8xf32> to vector<8xf32>
    %286 = vector.shape_cast %285 : vector<8xf32> to vector<8x1xf32>
    %287 = tpu.reciprocal %286 {approx = true} : vector<8x1xf32> -> vector<8x1xf32>
    %288 = vector.broadcast %287 : vector<8x1xf32> to vector<8x8xf32>
    %289 = arith.mulf %284, %288 : vector<8x8xf32>
    %290 = arith.truncf %289 : vector<8x8xf32> to vector<8x8xbf16>
    "tpu.trace_start"() <{level = 10 : i32, message = "nm,md->nd"}> : () -> ()
    %cst_101 = arith.constant dense<0.000000e+00> : vector<8x8xf32>
    %291 = tpu.matmul %290, %282, %cst_101 {dimension_numbers = #tpu.dot_dimension_numbers<[1], [0], [0], [1], [0, 0, 1, 1], [], []>} : vector<8x8xbf16>, vector<8x8xbf16>, vector<8x8xf32> -> vector<8x8xf32>
    "tpu.trace_stop"() : () -> ()
    %c0_102 = arith.constant 0 : index
    %c8_103 = arith.constant 8 : index
    %292 = vector.load %arg18[%c0_102, %c8_103] : memref<8x32xf32, #tpu.memory_space<vmem>>, vector<8x8xf32>
    tpu.vector_store %arg18[%c0_102, %c8_103], %291 {strides = array<i32>} : memref<8x32xf32, #tpu.memory_space<vmem>>, vector<8x8xf32>,
    %293 = vector.extract_strided_slice %247 {offsets = [0, 16], sizes = [8, 8], strides = [1, 1]} : vector<8x32xf32> to vector<8x8xf32>
    %294 = arith.truncf %293 : vector<8x8xf32> to vector<8x8xbf16>
    %295 = vector.extract_strided_slice %259 {offsets = [0, 16], sizes = [8, 8], strides = [1, 1]} : vector<8x32xf32> to vector<8x8xf32>
    %296 = arith.truncf %295 : vector<8x8xf32> to vector<8x8xbf16>
    %297 = vector.extract_strided_slice %260 {offsets = [0, 16], sizes = [8, 8], strides = [1, 1]} : vector<8x32xf32> to vector<8x8xf32>
    %298 = arith.truncf %297 : vector<8x8xf32> to vector<8x8xbf16>
    "tpu.trace_start"() <{level = 10 : i32, message = "nd,md->nm"}> : () -> ()
    %cst_104 = arith.constant dense<0.000000e+00> : vector<8x8xf32>
    %299 = tpu.matmul %294, %296, %cst_104 {dimension_numbers = #tpu.dot_dimension_numbers<[1], [1], [0], [0], [0, 0, 1, 0], [], []>} : vector<8x8xbf16>, vector<8x8xbf16>, vector<8x8xf32> -> vector<8x8xf32>
    "tpu.trace_stop"() : () -> ()
    %300 = math.exp %299 : vector<8x8xf32>
    %cst_105 = arith.constant dense<0.000000e+00> : vector<8xf32>
    %301 = vector.multi_reduction <add>, %300, %cst_105 [1] : vector<8x8xf32> to vector<8xf32>
    %302 = vector.shape_cast %301 : vector<8xf32> to vector<8x1xf32>
    %303 = tpu.reciprocal %302 {approx = true} : vector<8x1xf32> -> vector<8x1xf32>
    %304 = vector.broadcast %303 : vector<8x1xf32> to vector<8x8xf32>
    %305 = arith.mulf %300, %304 : vector<8x8xf32>
    %306 = arith.truncf %305 : vector<8x8xf32> to vector<8x8xbf16>
    "tpu.trace_start"() <{level = 10 : i32, message = "nm,md->nd"}> : () -> ()
    %cst_106 = arith.constant dense<0.000000e+00> : vector<8x8xf32>
    %307 = tpu.matmul %306, %298, %cst_106 {dimension_numbers = #tpu.dot_dimension_numbers<[1], [0], [0], [1], [0, 0, 1, 1], [], []>} : vector<8x8xbf16>, vector<8x8xbf16>, vector<8x8xf32> -> vector<8x8xf32>
    "tpu.trace_stop"() : () -> ()
    %c0_107 = arith.constant 0 : index
    %c16_108 = arith.constant 16 : index
    %308 = vector.load %arg18[%c0_107, %c16_108] : memref<8x32xf32, #tpu.memory_space<vmem>>, vector<8x8xf32>
    tpu.vector_store %arg18[%c0_107, %c16_108], %307 {strides = array<i32>} : memref<8x32xf32, #tpu.memory_space<vmem>>, vector<8x8xf32>,
    %309 = vector.extract_strided_slice %247 {offsets = [0, 24], sizes = [8, 8], strides = [1, 1]} : vector<8x32xf32> to vector<8x8xf32>
    %310 = arith.truncf %309 : vector<8x8xf32> to vector<8x8xbf16>
    %311 = vector.extract_strided_slice %259 {offsets = [0, 24], sizes = [8, 8], strides = [1, 1]} : vector<8x32xf32> to vector<8x8xf32>
    %312 = arith.truncf %311 : vector<8x8xf32> to vector<8x8xbf16>
    %313 = vector.extract_strided_slice %260 {offsets = [0, 24], sizes = [8, 8], strides = [1, 1]} : vector<8x32xf32> to vector<8x8xf32>
    %314 = arith.truncf %313 : vector<8x8xf32> to vector<8x8xbf16>
    "tpu.trace_start"() <{level = 10 : i32, message = "nd,md->nm"}> : () -> ()
    %cst_109 = arith.constant dense<0.000000e+00> : vector<8x8xf32>
    %315 = tpu.matmul %310, %312, %cst_109 {dimension_numbers = #tpu.dot_dimension_numbers<[1], [1], [0], [0], [0, 0, 1, 0], [], []>} : vector<8x8xbf16>, vector<8x8xbf16>, vector<8x8xf32> -> vector<8x8xf32>
    "tpu.trace_stop"() : () -> ()
    %316 = math.exp %315 : vector<8x8xf32>
    %cst_110 = arith.constant dense<0.000000e+00> : vector<8xf32>
    %317 = vector.multi_reduction <add>, %316, %cst_110 [1] : vector<8x8xf32> to vector<8xf32>
    %318 = vector.shape_cast %317 : vector<8xf32> to vector<8x1xf32>
    %319 = tpu.reciprocal %318 {approx = true} : vector<8x1xf32> -> vector<8x1xf32>
    %320 = vector.broadcast %319 : vector<8x1xf32> to vector<8x8xf32>
    %321 = arith.mulf %316, %320 : vector<8x8xf32>
    %322 = arith.truncf %321 : vector<8x8xf32> to vector<8x8xbf16>
    "tpu.trace_start"() <{level = 10 : i32, message = "nm,md->nd"}> : () -> ()
    %cst_111 = arith.constant dense<0.000000e+00> : vector<8x8xf32>
    %323 = tpu.matmul %322, %314, %cst_111 {dimension_numbers = #tpu.dot_dimension_numbers<[1], [0], [0], [1], [0, 0, 1, 1], [], []>} : vector<8x8xbf16>, vector<8x8xbf16>, vector<8x8xf32> -> vector<8x8xf32>
    "tpu.trace_stop"() : () -> ()
    %c0_112 = arith.constant 0 : index
    %c24_113 = arith.constant 24 : index
    %324 = vector.load %arg18[%c0_112, %c24_113] : memref<8x32xf32, #tpu.memory_space<vmem>>, vector<8x8xf32>
    tpu.vector_store %arg18[%c0_112, %c24_113], %323 {strides = array<i32>} : memref<8x32xf32, #tpu.memory_space<vmem>>, vector<8x8xf32>,
    %c0_114 = arith.constant 0 : index
    %c0_115 = arith.constant 0 : index
    %325 = vector.load %arg18[%c0_114, %c0_115] : memref<8x32xf32, #tpu.memory_space<vmem>>, vector<8x32xf32>
    %326 = arith.truncf %325 : vector<8x32xf32> to vector<8x32xbf16>
    %327 = arith.index_cast %c1_i32 : i32 to index
    %c0_116 = arith.constant 0 : index
    %c0_117 = arith.constant 0 : index
    %328 = vector.load %arg9[%327, %c0_116, %c0_117] : memref<2x32x32xbf16, #tpu.memory_space<vmem>>, vector<1x32x32xbf16>
    %329 = vector.shape_cast %328 : vector<1x32x32xbf16> to vector<32x32xbf16>
    %cst_118 = arith.constant dense<0.000000e+00> : vector<8x32xf32>
    %330 = tpu.matmul %326, %329, %cst_118 {dimension_numbers = #tpu.dot_dimension_numbers<[1], [0], [0], [1], [0, 0, 1, 1], [], []>} : vector<8x32xbf16>, vector<32x32xbf16>, vector<8x32xf32> -> vector<8x32xf32>
    %331 = arith.index_cast %c1_i32 : i32 to index
    %c0_119 = arith.constant 0 : index
    %c0_120 = arith.constant 0 : index
    %332 = vector.load %arg10[%331, %c0_119, %c0_120] : memref<2x1x32xf32, #tpu.memory_space<vmem>>, vector<1x1x32xf32>
    %333 = vector.shape_cast %332 : vector<1x1x32xf32> to vector<1x32xf32>
    %334 = vector.broadcast %333 : vector<1x32xf32> to vector<8x32xf32>
    %335 = arith.addf %330, %334 : vector<8x32xf32>
    %336 = arith.addf %199, %335 : vector<8x32xf32>
    %337 = arith.index_cast %c1_i32 : i32 to index
    %c0_121 = arith.constant 0 : index
    %c0_122 = arith.constant 0 : index
    %338 = vector.load %arg11[%337, %c0_121, %c0_122] : memref<2x1x32xf32, #tpu.memory_space<vmem>>, vector<1x1x32xf32>
    %339 = vector.shape_cast %338 : vector<1x1x32xf32> to vector<1x32xf32>
    %340 = arith.index_cast %c1_i32 : i32 to index
    %c0_123 = arith.constant 0 : index
    %c0_124 = arith.constant 0 : index
    %341 = vector.load %arg12[%340, %c0_123, %c0_124] : memref<2x1x32xf32, #tpu.memory_space<vmem>>, vector<1x1x32xf32>
    %342 = vector.shape_cast %341 : vector<1x1x32xf32> to vector<1x32xf32>
    %cst_125 = arith.constant dense<0.000000e+00> : vector<8xf32>
    %343 = vector.multi_reduction <add>, %336, %cst_125 [1] : vector<8x32xf32> to vector<8xf32>
    %344 = vector.shape_cast %343 : vector<8xf32> to vector<8x1xf32>
    %cst_126 = arith.constant 3.200000e+01 : f32
    %345 = vector.broadcast %cst_126 : f32 to vector<8x1xf32>
    %346 = arith.divf %344, %345 : vector<8x1xf32>
    %347 = vector.broadcast %346 : vector<8x1xf32> to vector<8x32xf32>
    %348 = arith.subf %336, %347 : vector<8x32xf32>
    %349 = arith.mulf %348, %348 : vector<8x32xf32>
    %cst_127 = arith.constant dense<0.000000e+00> : vector<8xf32>
    %350 = vector.multi_reduction <add>, %349, %cst_127 [1] : vector<8x32xf32> to vector<8xf32>
    %351 = vector.shape_cast %350 : vector<8xf32> to vector<8x1xf32>
    %cst_128 = arith.constant 3.200000e+01 : f32
    %352 = vector.broadcast %cst_128 : f32 to vector<8x1xf32>
    %353 = arith.divf %351, %352 : vector<8x1xf32>
    %cst_129 = arith.constant 9.99999974E-6 : f32
    %354 = vector.broadcast %cst_129 : f32 to vector<8x1xf32>
    %355 = arith.addf %353, %354 : vector<8x1xf32>
    %356 = math.rsqrt %355 : vector<8x1xf32>
    %357 = vector.broadcast %356 : vector<8x1xf32> to vector<8x32xf32>
    %358 = arith.mulf %348, %357 : vector<8x32xf32>
    %359 = vector.broadcast %339 : vector<1x32xf32> to vector<8x32xf32>
    %360 = arith.mulf %358, %359 : vector<8x32xf32>
    %361 = vector.broadcast %342 : vector<1x32xf32> to vector<8x32xf32>
    %362 = arith.addf %360, %361 : vector<8x32xf32>
    %363 = arith.truncf %362 : vector<8x32xf32> to vector<8x32xbf16>
    %364 = arith.index_cast %c1_i32 : i32 to index
    %c0_130 = arith.constant 0 : index
    %c0_131 = arith.constant 0 : index
    %365 = vector.load %arg13[%364, %c0_130, %c0_131] : memref<2x32x128xbf16, #tpu.memory_space<vmem>>, vector<1x32x128xbf16>
    %366 = vector.shape_cast %365 : vector<1x32x128xbf16> to vector<32x128xbf16>
    %cst_132 = arith.constant dense<0.000000e+00> : vector<8x128xf32>
    %367 = tpu.matmul %363, %366, %cst_132 {dimension_numbers = #tpu.dot_dimension_numbers<[1], [0], [0], [1], [0, 0, 1, 1], [], []>} : vector<8x32xbf16>, vector<32x128xbf16>, vector<8x128xf32> -> vector<8x128xf32>
    %368 = arith.index_cast %c1_i32 : i32 to index
    %c0_133 = arith.constant 0 : index
    %c0_134 = arith.constant 0 : index
    %369 = vector.load %arg14[%368, %c0_133, %c0_134] : memref<2x1x128xf32, #tpu.memory_space<vmem>>, vector<1x1x128xf32>
    %370 = vector.shape_cast %369 : vector<1x1x128xf32> to vector<1x128xf32>
    %371 = vector.broadcast %370 : vector<1x128xf32> to vector<8x128xf32>
    %372 = arith.addf %367, %371 : vector<8x128xf32>
    %373 = arith.mulf %372, %372 : vector<8x128xf32>
    %374 = arith.mulf %372, %373 : vector<8x128xf32>
    %cst_135 = arith.constant 4.471500e-02 : f32
    %375 = vector.broadcast %cst_135 : f32 to vector<8x128xf32>
    %376 = arith.mulf %375, %374 : vector<8x128xf32>
    %377 = arith.addf %372, %376 : vector<8x128xf32>
    %cst_136 = arith.constant 0.797884583 : f32
    %378 = vector.broadcast %cst_136 : f32 to vector<8x128xf32>
    %379 = arith.mulf %378, %377 : vector<8x128xf32>
    %380 = math.tanh %379 : vector<8x128xf32>
    %cst_137 = arith.constant 1.000000e+00 : f32
    %381 = vector.broadcast %cst_137 : f32 to vector<8x128xf32>
    %382 = arith.addf %381, %380 : vector<8x128xf32>
    %cst_138 = arith.constant 5.000000e-01 : f32
    %383 = vector.broadcast %cst_138 : f32 to vector<8x128xf32>
    %384 = arith.mulf %383, %382 : vector<8x128xf32>
    %385 = arith.mulf %372, %384 : vector<8x128xf32>
    %386 = arith.truncf %385 : vector<8x128xf32> to vector<8x128xbf16>
    %387 = arith.index_cast %c1_i32 : i32 to index
    %c0_139 = arith.constant 0 : index
    %c0_140 = arith.constant 0 : index
    %388 = vector.load %arg15[%387, %c0_139, %c0_140] : memref<2x128x32xbf16, #tpu.memory_space<vmem>>, vector<1x128x32xbf16>
    %389 = vector.shape_cast %388 : vector<1x128x32xbf16> to vector<128x32xbf16>
    %cst_141 = arith.constant dense<0.000000e+00> : vector<8x32xf32>
    %390 = tpu.matmul %386, %389, %cst_141 {dimension_numbers = #tpu.dot_dimension_numbers<[1], [0], [0], [1], [0, 0, 1, 1], [], []>} : vector<8x128xbf16>, vector<128x32xbf16>, vector<8x32xf32> -> vector<8x32xf32>
    %391 = arith.index_cast %c1_i32 : i32 to index
    %c0_142 = arith.constant 0 : index
    %c0_143 = arith.constant 0 : index
    %392 = vector.load %arg16[%391, %c0_142, %c0_143] : memref<2x1x32xf32, #tpu.memory_space<vmem>>, vector<1x1x32xf32>
    %393 = vector.shape_cast %392 : vector<1x1x32xf32> to vector<1x32xf32>
    %394 = vector.broadcast %393 : vector<1x32xf32> to vector<8x32xf32>
    %395 = arith.addf %390, %394 : vector<8x32xf32>
    %396 = arith.addf %336, %395 : vector<8x32xf32>
    %c2_i32 = arith.constant 2 : i32
    %c0_144 = arith.constant 0 : index
    %c0_145 = arith.constant 0 : index
    %c0_146 = arith.constant 0 : index
    %397 = vector.load %arg17[%c0_144, %c0_145, %c0_146] : memref<1x8x32xf32, #tpu.memory_space<vmem>>, vector<1x8x32xf32>
    %398 = vector.shape_cast %397 : vector<1x8x32xf32> to vector<8x32xf32>
    %399 = vector.shape_cast %396 : vector<8x32xf32> to vector<1x8x32xf32>
    tpu.vector_store %arg17[%c0_144, %c0_145, %c0_146], %399 {strides = array<i32>} : memref<1x8x32xf32, #tpu.memory_space<vmem>>, vector<1x8x32xf32>,
    return
  }
  func.func @transform_0(%arg0: i32) -> (i32, i32, i32) {
    %c0_i32 = arith.constant 0 : i32
    %c0_i32_0 = arith.constant 0 : i32
    %c0_i32_1 = arith.constant 0 : i32
    return %arg0, %c0_i32, %c0_i32_0 : i32, i32, i32
  }
  func.func @transform_1(%arg0: i32) -> (i32, i32) {
    %c0_i32 = arith.constant 0 : i32
    %c0_i32_0 = arith.constant 0 : i32
    %c0_i32_1 = arith.constant 0 : i32
    return %c0_i32, %c0_i32_0 : i32, i32
  }
  func.func @transform_2(%arg0: i32) -> (i32, i32, i32) {
    %c0_i32 = arith.constant 0 : i32
    %c0_i32_0 = arith.constant 0 : i32
    %c0_i32_1 = arith.constant 0 : i32
    %c0_i32_2 = arith.constant 0 : i32
    return %c0_i32, %c0_i32_0, %c0_i32_1 : i32, i32, i32
  }
  func.func @transform_3(%arg0: i32) -> (i32, i32, i32) {
    %c0_i32 = arith.constant 0 : i32
    %c0_i32_0 = arith.constant 0 : i32
    %c0_i32_1 = arith.constant 0 : i32
    %c0_i32_2 = arith.constant 0 : i32
    return %c0_i32, %c0_i32_0, %c0_i32_1 : i32, i32, i32
  }
  func.func @transform_4(%arg0: i32) -> (i32, i32, i32) {
    %c0_i32 = arith.constant 0 : i32
    %c0_i32_0 = arith.constant 0 : i32
    %c0_i32_1 = arith.constant 0 : i32
    %c0_i32_2 = arith.constant 0 : i32
    return %c0_i32, %c0_i32_0, %c0_i32_1 : i32, i32, i32
  }
  func.func @transform_5(%arg0: i32) -> (i32, i32, i32) {
    %c0_i32 = arith.constant 0 : i32
    %c0_i32_0 = arith.constant 0 : i32
    %c0_i32_1 = arith.constant 0 : i32
    %c0_i32_2 = arith.constant 0 : i32
    return %c0_i32, %c0_i32_0, %c0_i32_1 : i32, i32, i32
  }
  func.func @transform_6(%arg0: i32) -> (i32, i32, i32) {
    %c0_i32 = arith.constant 0 : i32
    %c0_i32_0 = arith.constant 0 : i32
    %c0_i32_1 = arith.constant 0 : i32
    %c0_i32_2 = arith.constant 0 : i32
    return %c0_i32, %c0_i32_0, %c0_i32_1 : i32, i32, i32
  }
  func.func @transform_7(%arg0: i32) -> (i32, i32, i32) {
    %c0_i32 = arith.constant 0 : i32
    %c0_i32_0 = arith.constant 0 : i32
    %c0_i32_1 = arith.constant 0 : i32
    %c0_i32_2 = arith.constant 0 : i32
    return %c0_i32, %c0_i32_0, %c0_i32_1 : i32, i32, i32
  }
  func.func @transform_8(%arg0: i32) -> (i32, i32, i32) {
    %c0_i32 = arith.constant 0 : i32
    %c0_i32_0 = arith.constant 0 : i32
    %c0_i32_1 = arith.constant 0 : i32
    %c0_i32_2 = arith.constant 0 : i32
    return %c0_i32, %c0_i32_0, %c0_i32_1 : i32, i32, i32
  }
  func.func @transform_9(%arg0: i32) -> (i32, i32, i32) {
    %c0_i32 = arith.constant 0 : i32
    %c0_i32_0 = arith.constant 0 : i32
    %c0_i32_1 = arith.constant 0 : i32
    %c0_i32_2 = arith.constant 0 : i32
    return %c0_i32, %c0_i32_0, %c0_i32_1 : i32, i32, i32
  }
  func.func @transform_10(%arg0: i32) -> (i32, i32, i32) {
    %c0_i32 = arith.constant 0 : i32
    %c0_i32_0 = arith.constant 0 : i32
    %c0_i32_1 = arith.constant 0 : i32
    %c0_i32_2 = arith.constant 0 : i32
    return %c0_i32, %c0_i32_0, %c0_i32_1 : i32, i32, i32
  }
  func.func @transform_11(%arg0: i32) -> (i32, i32, i32) {
    %c0_i32 = arith.constant 0 : i32
    %c0_i32_0 = arith.constant 0 : i32
    %c0_i32_1 = arith.constant 0 : i32
    %c0_i32_2 = arith.constant 0 : i32
    return %c0_i32, %c0_i32_0, %c0_i32_1 : i32, i32, i32
  }
  func.func @transform_12(%arg0: i32) -> (i32, i32, i32) {
    %c0_i32 = arith.constant 0 : i32
    %c0_i32_0 = arith.constant 0 : i32
    %c0_i32_1 = arith.constant 0 : i32
    %c0_i32_2 = arith.constant 0 : i32
    return %c0_i32, %c0_i32_0, %c0_i32_1 : i32, i32, i32
  }
  func.func @transform_13(%arg0: i32) -> (i32, i32, i32) {
    %c0_i32 = arith.constant 0 : i32
    %c0_i32_0 = arith.constant 0 : i32
    %c0_i32_1 = arith.constant 0 : i32
    %c0_i32_2 = arith.constant 0 : i32
    return %c0_i32, %c0_i32_0, %c0_i32_1 : i32, i32, i32
  }
  func.func @transform_14(%arg0: i32) -> (i32, i32, i32) {
    %c0_i32 = arith.constant 0 : i32
    %c0_i32_0 = arith.constant 0 : i32
    %c0_i32_1 = arith.constant 0 : i32
    %c0_i32_2 = arith.constant 0 : i32
    return %c0_i32, %c0_i32_0, %c0_i32_1 : i32, i32, i32
  }
  func.func @transform_15(%arg0: i32) -> (i32, i32, i32) {
    %c0_i32 = arith.constant 0 : i32
    %c0_i32_0 = arith.constant 0 : i32
    %c0_i32_1 = arith.constant 0 : i32
    %c0_i32_2 = arith.constant 0 : i32
    return %c0_i32, %c0_i32_0, %c0_i32_1 : i32, i32, i32
  }
  func.func @transform_16(%arg0: i32) -> (i32, i32, i32) {
    %c0_i32 = arith.constant 0 : i32
    %c0_i32_0 = arith.constant 0 : i32
    %c0_i32_1 = arith.constant 0 : i32
    return %arg0, %c0_i32, %c0_i32_0 : i32, i32, i32
  }
}

</mosaic_0001>

<bundles_post_ra>
// kernel: tpu_custom_call.1
= control target key start
LH: loop header
LB: loop body
LE: loop exit
PB: predicated region body
PF: predicated region fallthrough
CT: control target
= control target key end

     0   :  { %s2702_s0 = inlined_call_operand.vmem [shape: f32[2,8,32], index: 0, kind: input, shape index: {}]   ;;  %s2703_s1 = inlined_call_operand.vmem [shape: f32[32,32], index: 1, kind: input, shape index: {}]   ;;  %s2704_s2 = inlined_call_operand.vmem [shape: f32[2,1,32], index: 2, kind: input, shape index: {}]   ;;  %s2705_s3 = inlined_call_operand.vmem [shape: f32[2,1,32], index: 3, kind: input, shape index: {}]   ;;  %s2706_s4 = inlined_call_operand.vmem [shape: bf16[2,32,96], index: 4, kind: input, shape index: {}]   ;;  %s2707_s5 = inlined_call_operand.vmem [shape: f32[2,1,96], index: 5, kind: input, shape index: {}]   ;;  %s2708_s6 = inlined_call_operand.vmem [shape: f32[2,1,32], index: 6, kind: input, shape index: {}]   ;;  %s2709_s7 = inlined_call_operand.vmem [shape: f32[2,1,32], index: 7, kind: input, shape index: {}]   ;;  %s2710_s8 = inlined_call_operand.vmem [shape: bf16[2,32,32], index: 8, kind: input, shape index: {}]   ;;  %s2711_s9 = inlined_call_operand.vmem [shape: f32[2,1,32], index: 9, kind: input, shape index: {}]   ;;  %s2712_s10 = inlined_call_operand.vmem [shape: f32[2,1,32], index: 10, kind: input, shape index: {}]   ;;  %s2713_s11 = inlined_call_operand.vmem [shape: f32[2,1,32], index: 11, kind: input, shape index: {}]   ;;  %s2714_s12 = inlined_call_operand.vmem [shape: bf16[2,32,128], index: 12, kind: input, shape index: {}]   ;;  %s2715_s13 = inlined_call_operand.vmem [shape: f32[2,1,128], index: 13, kind: input, shape index: {}]   ;;  %s2716_s14 = inlined_call_operand.vmem [shape: bf16[2,128,32], index: 14, kind: input, shape index: {}]   ;;  %s2717_s15 = inlined_call_operand.vmem [shape: f32[2,1,32], index: 15, kind: input, shape index: {}]   ;;  %s2718_s16 = inlined_call_operand.hbm [shape: f32[2,8,32], index: 16, kind: output, shape index: {}]  }
   0x1   :  { %2739 = sst [smem:[#allocation9_spill]] %s2702_s0 }
   0x2   :  { %2740 = sst [smem:[#allocation10_spill]] %s2703_s1 }
   0x3   :  { %2741 = sst [smem:[#allocation11_spill]] %s2704_s2 }
   0x4   :  { %2742 = sst [smem:[#allocation12_spill]] %s2705_s3 }
   0x5   :  { %21 = vsyncpa [#allocation4], 0 }
   0x6   :  { %23 = vsyncpa [#allocation4 + $0x1], 0  ;;  %s2300_s21 = smov 0   ;;  %s2302_s22 = smov 0  }
   0x7   :  { %s2304_s23 = smov 0   ;;  %s2306_s24 = smov 0  }
   0x8 LB: > { %2743 = sst [smem:[#allocation6_spill]] %s2193_s23  ;;  %s2321_s25 = sadd.s32 4294967295, %s2197_s24   ;;  %s2197_s24 = sphi %s2306_s24, %s2767_s24   ;;  %s2193_s23 = sphi %s2304_s23, %s2769_s23   ;;  %s2189_s22 = sphi %s2302_s22, %s2771_s22   ;;  %s2185_s21 = sphi %s2300_s21, %s2770_s21  }
   0x9   : > { %s1792_s26 = sadd.s32 4294967294, %s2197_s24   ;;  %s2325_s27 = sadd.s32 1, %s2197_s24  }
   0xa   : > { %2744 = sst [smem:[#allocation7_spill]] %s2325_s27  ;;  %s377_s28 = sadd.s32 1, %s2193_s23 }
   0xb   : > { %s374_s29 = ssub.s32 %s2197_s24, %s2325_s27  ;;  %p387_p0 = scmp.ne.s32.totalorder %s2193_s23, %s2189_s22 }
   0xc   : > { %p375_p1 = scmp.eq.s32.totalorder %s374_s29, 0  ;;  %p388_p2 = scmp.eq.s32.totalorder %s2321_s25, 1 }
   0xd   : > { %p393_p3 = scmp.ne.s32.totalorder %s2189_s22, %s2185_s21  ;;  %p394_p4 = scmp.eq.s32.totalorder %s1792_s26, 1 }
   0xe   : > { %s2336_s30 = scalar_select %p375_p1, %s2193_s23, %s377_s28  }
   0xf   : > { %p2338_p5 = por %p388_p2, %p387_p0  ;;  %p2342_p6 = por %p394_p4, %p393_p3 }
  0x10   : > { %2745 = sst [smem:[#allocation8_spill]] %s2336_s30  ;;  %p1795_p7 = scmp.ge.s32.totalorder %s2197_s24, 1 }
  0x11   : > { %p464_p8 = scmp.lt.s32.totalorder %s2197_s24, 3 }
  0x13   : > { %p465_p9 = pnand %p1795_p7, %p464_p8 }
  0x14   : > { %p513_p10 = scmp.lt.s32.totalorder (!%p465_p9), %s2321_s25, 1  ;;  %s2748_s28 = sld [smem:[#allocation9_spill]] (!%p465_p9) }
  0x15   : > { %468 = sbr.rel (%p465_p9) target bundleno = 4312 (0x10d8), region = 84  ;;  %s2749_s1 = sld [smem:[#allocation10_spill]] (!%p465_p9) }
  0x16   : > { %s2750_s2 = sld [smem:[#allocation11_spill]] (!%p465_p9)  ;;  %s2731_s30 = smov (!%p465_p9), 96  }
  0x17   : > { %s2751_s3 = sld [smem:[#allocation12_spill]] (!%p465_p9)  ;;  %s2729_s20 = smov (!%p465_p9), 80  }
  0x18   : > { %s2728_s26 = smov (!%p465_p9), 104   ;;  %s2756_s23 = smov (!%p465_p9), 80  }
  0x19   : > { %s2757_s27 = smov (!%p465_p9), 120  }
  0x1a   : > { %s514_s18 = scalar_select %p513_p10, %s2321_s25, 1  ;;  %vm525_vm0 = vcmask 261120   ;;  %v2199_v2 = vmov 32.0   ;;  %v1979_v14 = vld [vmem:[%s2706_s4 + $0x8] sm:$0xff]  ;;  %v1978_v15 = vld [vmem:[%s2706_s4] sm:$0xff]  ;;  %vm692_vm11 = vcmask 64512  }
  0x1b   : > { %2081 = vrcp.f32 %v2199_v2  ;;  %593 = vmatpush.bf16.msra.mxu0 %v1979_v14  ;;  %v2371_v16 = vld [vmem:[%s2749_s1 + $0x18] sm:$0xff]  ;;  %v2385_v33 = vld [vmem:[%s2749_s1 + $0x10] sm:$0xff]  ;;  %v2391_v34 = vld [vmem:[%s2749_s1 + $0x8] sm:$0xff]  ;;  %vm726_vm12 = vcmask 1043456   ;;  %vm801_vm13 = vcmask 130112   ;;  %vm859_vm14 = vcmask 195712  }
  0x1c   : > { %s1797_s19 = sshll.u32 %s514_s18, 3  ;;  %617 = vmatpush.msra.mxu2 %v2371_v16  ;;  %v2061_v26 = vld [vmem:[%s2750_s2] ss:$0 sm:$0xff]  ;;  %s2730_s18 = smov 72   ;;  %vm917_vm15 = vcmask 261312  }
  0x1d   : > { %s516_s29 = scalar_lea.vmem %s2748_s28, %s1797_s19  ;;  %v2062_v29 = vld [vmem:[%s2751_s3] ss:$0 sm:$0xff]  ;;  %s2720_s19 = smov 32  }
  0x1e   : > { %v2353_v0 = vld [vmem:[%s516_s29] sm:$0xff]  ;;  %618 = vmatpush.msra.mxu2 %v2385_v33  ;;  %s2719_s28 = smov 120   ;;  %s2722_s29 = smov 88  }
  0x1f   : > { %v526_v1 = vsel %vm525_vm0, %v2353_v0, 0.0  ;;  %594 = vmatpush.bf16.msra.mxu0 %v1978_v15  ;;  %v2396_v35 = vld [vmem:[%s2749_s1] sm:$0xff]  ;;  %s2754_s1 = smov 72  }
  0x20   : > { %527 = vadd.xlane.f32.xlu0 %v526_v1  ;;  %619 = vmatpush.msra.mxu2 %v2391_v34  ;;  %v2063_v36 = vld [vmem:[%s2707_s5] ss:$0 sm:$0xff] }
  0x21   : > { %v2082_v3 = vpop.eup %2081  ;;  %v2065_v46 = vld [vmem:[%s2709_s7] ss:$0 sm:$0xff] }
  0x22   : > { %v530_v4 = vmul.f32 32.0, %v2082_v3  ;;  %vm534_vm1 = vweird.f32 %v2082_v3  ;;  %620 = vmatpush.msra.mxu2 %v2396_v35  ;;  %682 = vrot.lane.b32.xlu2 %v2065_v46, %s2720_s19  ;;  %v2064_v61 = vld [vmem:[%s2708_s6] ss:$0 sm:$0xff] }
  0x24   : > { %v531_v5 = vsub.f32 1.0, %v530_v4  ;;  %657 = vmatpush.msrb.mxu2 %v2371_v16 }
  0x26   : > { %v532_v6 = vmul.f32 %v2082_v3, %v531_v5  ;;  %658 = vmatpush.msrb.mxu2 %v2385_v33 }
  0x28   : > { %v533_v7 = vadd.f32 %v2082_v3, %v532_v6  ;;  %659 = vmatpush.msrb.mxu2 %v2391_v34 }
  0x2a   : > { %v2357_v8 = vsel %vm534_vm1, %v2082_v3, %v533_v7  ;;  %660 = vmatpush.msrb.mxu2 %v2396_v35 }
  0x7c   : > { %v683_v3 = vpop.permute.xlu2 %682 }
  0x93   : > { %v528_v9 = vpop.xlane.xlu0 %527 }
  0x94   : > { %v536_v10 = vmul.f32 %v2357_v8, %v528_v9 }
  0x96   : > { %v537_v11 = vsub.f32 %v2353_v0, %v536_v10 }
  0x98   : > { %v538_v12 = vmul.f32 %v537_v11, %v537_v11 }
  0x9a   : > { %v539_v13 = vsel %vm525_vm0, %v538_v12, 0.0 }
  0x9b   : > { %540 = vadd.xlane.f32.xlu0 %v539_v13 }
 0x10e   : > { %v541_v17 = vpop.xlane.xlu0 %540 }
 0x10f   : > { %v542_v18 = vmul.f32 %v541_v17, %v2357_v8 }
 0x111   : > { %v543_v19 = vadd.f32 1e-05, %v542_v18 }
 0x113   : > { %2083 = vrsqrt.f32 %v543_v19  ;;  %vm550_vm3 = vweird.f32 %v543_v19 }
 0x119   : > { %v2084_v20 = vpop.eup %2083 }
 0x11a   : > { %v545_v21 = vmul.f32 %v2084_v20, %v543_v19  ;;  %vm551_vm2 = vweird.f32 %v2084_v20 }
 0x11b   : > { %vm552_vm4 = vmor %vm550_vm3, %vm551_vm2 }
 0x11c   : > { %v546_v22 = vmul.f32 %v2084_v20, %v545_v21 }
 0x11e   : > { %v547_v23 = vmul.f32 0.5, %v546_v22 }
 0x120   : > { %v548_v24 = vsub.f32 1.5, %v547_v23 }
 0x122   : > { %v549_v25 = vmul.f32 %v2084_v20, %v548_v24 }
 0x124   : > { %v553_v27 = vsel %vm552_vm4, %v2084_v20, %v549_v25 }
 0x125   : > { %v554_v28 = vmul.f32 %v553_v27, %v537_v11 }
 0x127   : > { %v558_v30 = vmul.f32 %v2061_v26, %v554_v28 }
 0x129   : > { %v562_v31 = vadd.f32 %v2062_v29, %v558_v30 }
 0x12b   : > { %v563_v32 = vpack.c.bf16 %v562_v31, %v562_v31 }
 0x12d   : > { %1806 = vmatmul.msk.bf16.vlgmr.msra.gmra.mxu0 %vm525_vm0, %v563_v32 }
 0x1aa   : > { %v596_v37 = vpop.f32.mrf.mxu0 }
 0x1ab   : > { %v597_v38 = vadd.f32 %v2063_v36, %v596_v37 }
 0x1ad   : > { %v601_v39 = vmul.f32 %v597_v38, %v597_v38  ;;  %v2424_v7 = vpack.c.bf16 %v597_v38, %v597_v38 }
 0x1af   : > { %641 = vrot.lane.b32.xlu1 %v601_v39, %s2731_s30  ;;  %1807 = vmatmul.msk.f32.vlgmr.msra.gmra.mxu2 %vm525_vm0, %v601_v39 }
 0x1b2   : > { %v598_v40 = vpop.f32.mrf.mxu0 }
 0x221   : > { %v642_v41 = vpop.permute.xlu1 %641 }
 0x222   : > { %1808 = vmatmul.msk.f32.vlgmr.msrb.gmra.mxu2 %vm525_vm0, %v642_v41 }
 0x232   : > { %v622_v42 = vpop.f32.mrf.mxu2 }
 0x233   : > { %v623_v43 = vadd.f32 1e-06, %v622_v42 }
 0x235   : > { %2085 = vrsqrt.f32 %v623_v43  ;;  %vm631_vm6 = vweird.f32 %v623_v43 }
 0x23b   : > { %v2086_v44 = vpop.eup %2085 }
 0x23c   : > { %v626_v45 = vmul.f32 %v2086_v44, %v623_v43  ;;  %vm632_vm5 = vweird.f32 %v2086_v44 }
 0x23d   : > { %vm633_vm7 = vmor %vm631_vm6, %vm632_vm5 }
 0x23e   : > { %v627_v47 = vmul.f32 %v2086_v44, %v626_v45 }
 0x240   : > { %v628_v50 = vmul.f32 0.5, %v627_v47 }
 0x242   : > { %v629_v51 = vsub.f32 1.5, %v628_v50 }
 0x244   : > { %v630_v54 = vmul.f32 %v2086_v44, %v629_v51 }
 0x246   : > { %v634_v57 = vsel %vm633_vm7, %v2086_v44, %v630_v54 }
 0x247   : > { %v635_v60 = vmul.f32 %v634_v57, %v597_v38 }
 0x249   : > { %v639_v63 = vmul.f32 %v2064_v61, %v635_v60 }
 0x24b   : > { %v686_v1 = vpack.c.bf16 %v639_v63, %v639_v63 }
 0x2a5   : > { %v662_v48 = vpop.f32.mrf.mxu2 }
 0x2a6   : > { %v663_v49 = vadd.f32 1e-06, %v662_v48 }
 0x2a8   : > { %2087 = vrsqrt.f32 %v663_v49  ;;  %vm671_vm9 = vweird.f32 %v663_v49 }
 0x2ae   : > { %v2088_v52 = vpop.eup %2087 }
 0x2af   : > { %v666_v53 = vmul.f32 %v2088_v52, %v663_v49  ;;  %vm672_vm8 = vweird.f32 %v2088_v52 }
 0x2b0   : > { %vm673_vm10 = vmor %vm671_vm9, %vm672_vm8 }
 0x2b1   : > { %v667_v55 = vmul.f32 %v2088_v52, %v666_v53 }
 0x2b3   : > { %v668_v56 = vmul.f32 0.5, %v667_v55 }
 0x2b5   : > { %v669_v58 = vsub.f32 1.5, %v668_v56 }
 0x2b7   : > { %v670_v59 = vmul.f32 %v2088_v52, %v669_v58 }
 0x2b9   : > { %v674_v62 = vsel %vm673_vm10, %v2088_v52, %v670_v59 }
 0x2ba   : > { %676 = vrot.lane.b32.xlu1 %v674_v62, %s2720_s19  ;;  %s2723_s19 = smov 64  }
 0x2c2   : > { %745 = vrot.lane.b32.xlu1 %v686_v1, %s2719_s28  ;;  %s2727_s28 = smov 112  }
 0x32c   : > { %v677_v2 = vpop.permute.xlu1 %676 }
 0x32d   : > { %v679_v4 = vmul.f32 %v677_v2, %v597_v38 }
 0x32f   : > { %v685_v5 = vmul.f32 %v683_v3, %v679_v4 }
 0x331   : > { %v687_v6 = vpack.c.bf16 %v685_v5, %v685_v5 }
 0x333   : > { %747 = vrot.lane.b32.xlu0 %v687_v6, %s2722_s29  ;;  %690 = vrot.lane.b32.xlu2 %v687_v6, %s2731_s30  ;;  %s2724_s29 = smov 56   ;;  %s2759_s30 = smov 112  }
 0x334   : > { %863 = vrot.lane.b32.xlu1 %v687_v6, %s2730_s18  ;;  %v746_v13 = vpop.permute.xlu1 %745  ;;  %s2753_s18 = smov 32  }
 0x33b   : > { %805 = vrot.lane.b32.xlu2 %v687_v6, %s2729_s20  ;;  %s2763_s20 = smov 48  }
 0x33c   : > { %861 = vrot.lane.b32.xlu1 %v686_v1, %s2728_s26  ;;  %s2755_s26 = smov 88  }
 0x343   : > { %803 = vrot.lane.b32.xlu2 %v686_v1, %s2727_s28  ;;  %s2733_s28 = smov 24  }
 0x344   : > { %721 = vrot.lane.b32.xlu1 %v2424_v7, %s2723_s19  ;;  %s2725_s19 = smov 48  }
 0x34c   : > { %776 = vrot.lane.b32.xlu1 %v2424_v7, %s2724_s29  ;;  %s2726_s29 = smov 40  }
 0x38d   : > { %v691_v9 = vpop.permute.xlu2 %690 }
 0x38e   : > { %v697_v10 = vsel %vm692_vm11, %v691_v9, 0 }
 0x38f   : > { %706 = vmatpush.bf16.xpose.msra.mxu3 %v697_v10 }
 0x395   : > { %v806_v11 = vpop.permute.xlu2 %805 }
 0x396   : > { %1809 = vmatmul.msk.bf16.vlgmr.msra.gmra.mxu3 %vm692_vm11, %v686_v1  ;;  %v811_v12 = vsel %vm692_vm11, %v806_v11, 0 }
 0x397   : > { %820 = vmatpush.bf16.xpose.msrb.mxu3 %v811_v12 }
 0x39d   : > { %v804_v14 = vpop.permute.xlu2 %803 }
 0x3a5   : > { %v748_v15 = vpop.permute.xlu0 %747 }
 0x3a6   : > { %v753_v17 = vsel %vm692_vm11, %v748_v15, 0  ;;  %v864_v18 = vpop.permute.xlu1 %863  ;;  %1813 = vmatmul.msk.bf16.vlgmr.msrb.gmra.mxu3 %vm692_vm11, %v804_v14  ;;  %v1981_v14 = vld [vmem:[%s2710_s8 + $0x8] sm:$0xff]  ;;  %v1980_v15 = vld [vmem:[%s2710_s8] sm:$0xff] }
 0x3a7   : > { %v869_v19 = vsel %vm692_vm11, %v864_v18, 0  ;;  %762 = vmatpush.bf16.xpose.msra.mxu2 %v753_v17  ;;  %950 = vmatpush.bf16.msra.mxu3 %v1981_v14 }
 0x3ab   : > { %951 = vmatpush.bf16.msra.mxu3 %v1980_v15 }
 0x3ae   : > { %v862_v20 = vpop.permute.xlu1 %861  ;;  %1811 = vmatmul.msk.bf16.vlgmr.msra.gmra.mxu2 %vm692_vm11, %v746_v13 }
 0x3af   : > { %878 = vmatpush.bf16.xpose.msrb.mxu2 %v869_v19  ;;  %1210 = vmatpush.msrb.mxu3 %v2371_v16 }
 0x3b1   : > { %1211 = vmatpush.msrb.mxu3 %v2385_v33 }
 0x3b3   : > { %1212 = vmatpush.msrb.mxu3 %v2391_v34 }
 0x3b5   : > { %1213 = vmatpush.msrb.mxu3 %v2396_v35 }
 0x3b6   : > { %v722_v21 = vpop.permute.xlu1 %721 }
 0x3b7   : > { %v728_v22 = vsel %vm726_vm12, %v722_v21, 0 }
 0x3b8   : > { %737 = vmatpush.bf16.msra.mxu1 %v728_v22  ;;  %v2066_v22 = vld [vmem:[%s2711_s9] ss:$0 sm:$0xff] }
 0x3be   : > { %v777_v23 = vpop.permute.xlu1 %776  ;;  %1815 = vmatmul.msk.bf16.vlgmr.msrb.gmra.mxu2 %vm692_vm11, %v862_v20 }
 0x3bf   : > { %v782_v24 = vsel %vm726_vm12, %v777_v23, 0 }
 0x3c0   : > { %791 = vmatpush.bf16.msrb.mxu0 %v782_v24 }
 0x419   : > { %v708_v25 = vpop.f32.mrf.mxu3 }
 0x41a   : > { %v712_v26 = vmul.f32 1.442695, %v708_v25 }
 0x41c   : > { %2089 = vpow2.f32 %v712_v26 }
 0x421   : > { %v710_v27 = vpop.f32.mrf.mxu3 }
 0x422   : > { %v2090_v28 = vpop.eup %2089 }
 0x423   : > { %v714_v29 = vsel %vm692_vm11, %v2090_v28, 0.0 }
 0x424   : > { %715 = vadd.xlane.f32.xlu2 %v714_v29  ;;  %v1983_v29 = vld [vmem:[%s2714_s12 + $0x8] sm:$0xff] }
 0x429   : > { %v822_v30 = vpop.f32.mrf.mxu3 }
 0x42a   : > { %v826_v31 = vmul.f32 1.442695, %v822_v30  ;;  %v1991_v30 = vld [vmem:[%s2716_s14 + $0x38] sm:$0xff] }
 0x42b   : > { %1105 = vmatpush.bf16.msra.mxu2 %v1991_v30  ;;  %v2072_v30 = vld [vmem:[%s2751_s3 + $0x1] ss:$0 sm:$0xff] }
 0x42c   : > { %2091 = vpow2.f32 %v826_v31 }
 0x431   : > { %v764_v32 = vpop.f32.mrf.mxu2  ;;  %v824_v36 = vpop.f32.mrf.mxu3 }
 0x432   : > { %v2092_v37 = vpop.eup %2091  ;;  %v768_v38 = vmul.f32 1.442695, %v764_v32 }
 0x433   : > { %v828_v39 = vsel %vm692_vm11, %v2092_v37, 0.0 }
 0x434   : > { %2093 = vpow2.f32 %v768_v38  ;;  %829 = vadd.xlane.f32.xlu1 %v828_v39 }
 0x439   : > { %v766_v40 = vpop.f32.mrf.mxu2 }
 0x43a   : > { %v2094_v41 = vpop.eup %2093 }
 0x43b   : > { %v770_v42 = vsel %vm692_vm11, %v2094_v41, 0.0 }
 0x43c   : > { %771 = vadd.xlane.f32.xlu0 %v770_v42 }
 0x441   : > { %v880_v43 = vpop.f32.mrf.mxu2 }
 0x442   : > { %v884_v44 = vmul.f32 1.442695, %v880_v43  ;;  %v2067_v43 = vld [vmem:[%s2712_s10] ss:$0 sm:$0xff] }
 0x444   : > { %2095 = vpow2.f32 %v884_v44 }
 0x449   : > { %v882_v45 = vpop.f32.mrf.mxu2 }
 0x44a   : > { %v2096_v46 = vpop.eup %2095 }
 0x44b   : > { %v886_v47 = vsel %vm692_vm11, %v2096_v46, 0.0 }
 0x44c   : > { %887 = vadd.xlane.f32.xlu2 %v886_v47 }
 0x450   : > { %834 = vrot.lane.b32.xlu0 %v2424_v7, %s2725_s19  ;;  %s2735_s19 = smov 8  }
 0x464   : > { %892 = vrot.lane.b32.xlu2 %v2424_v7, %s2726_s29  ;;  %s2734_s29 = smov 16  }
 0x497   : > { %v716_v48 = vpop.xlane.xlu2 %715 }
 0x498   : > { %2097 = vrcp.f32 %v716_v48 }
 0x49e   : > { %v2098_v49 = vpop.eup %2097 }
 0x49f   : > { %v718_v50 = vmul.f32 %v2098_v49, %v2090_v28 }
 0x4a1   : > { %v719_v51 = vpack.c.bf16 %v718_v50, %v718_v50  ;;  %v1990_v50 = vld [vmem:[%s2716_s14 + $0x30] sm:$0xff] }
 0x4a2   : > { %1106 = vmatpush.bf16.msra.mxu2 %v1990_v50 }
 0x4a3   : > { %1810 = vmatmul.msk.bf16.vlgmr.msra.gmra.mxu1 %vm692_vm11, %v719_v51  ;;  %v1989_v51 = vld [vmem:[%s2716_s14 + $0x28] sm:$0xff] }
 0x4a6   : > { %1107 = vmatpush.bf16.msra.mxu2 %v1989_v51 }
 0x4a7   : > { %v830_v53 = vpop.xlane.xlu1 %829 }
 0x4af   : > { %v772_v52 = vpop.xlane.xlu0 %771 }
 0x4b0   : > { %2099 = vrcp.f32 %v772_v52  ;;  %v1988_v52 = vld [vmem:[%s2716_s14 + $0x20] sm:$0xff] }
 0x4b1   : > { %2101 = vrcp.f32 %v830_v53  ;;  %1108 = vmatpush.bf16.msra.mxu2 %v1988_v52  ;;  %v1987_v53 = vld [vmem:[%s2716_s14 + $0x18] sm:$0xff] }
 0x4b5   : > { %1109 = vmatpush.bf16.msra.mxu2 %v1987_v53 }
 0x4b6   : > { %v2100_v54 = vpop.eup %2099 }
 0x4b7   : > { %v774_v55 = vmul.f32 %v2100_v54, %v2094_v41  ;;  %v2102_v57 = vpop.eup %2101  ;;  %v1986_v54 = vld [vmem:[%s2716_s14 + $0x10] sm:$0xff] }
 0x4b8   : > { %v832_v59 = vmul.f32 %v2102_v57, %v2092_v37  ;;  %v2069_v57 = vld [vmem:[%s2715_s13] ss:$0 sm:$0xff] }
 0x4b9   : > { %v775_v56 = vpack.c.bf16 %v774_v55, %v774_v55  ;;  %1110 = vmatpush.bf16.msra.mxu2 %v1986_v54  ;;  %v1985_v55 = vld [vmem:[%s2716_s14 + $0x8] sm:$0xff] }
 0x4ba   : > { %v833_v62 = vpack.c.bf16 %v832_v59, %v832_v59 }
 0x4bb   : > { %1812 = vmatmul.msk.bf16.vlgmr.msrb.gmra.mxu0 %vm692_vm11, %v775_v56  ;;  %v1984_v56 = vld [vmem:[%s2716_s14] sm:$0xff] }
 0x4bd   : > { %1111 = vmatpush.bf16.msra.mxu2 %v1985_v55 }
 0x4bf   : > { %v888_v58 = vpop.xlane.xlu2 %887 }
 0x4c0   : > { %2103 = vrcp.f32 %v888_v58 }
 0x4c1   : > { %1112 = vmatpush.bf16.msra.mxu2 %v1984_v56 }
 0x4c2   : > { %v835_v60 = vpop.permute.xlu0 %834 }
 0x4c3   : > { %v840_v61 = vsel %vm726_vm12, %v835_v60, 0 }
 0x4c4   : > { %849 = vmatpush.bf16.msrb.mxu1 %v840_v61 }
 0x4c6   : > { %v2104_v63 = vpop.eup %2103 }
 0x4c7   : > { %v890_v1 = vmul.f32 %v2104_v63, %v2096_v46  ;;  %v893_v2 = vpop.permute.xlu2 %892  ;;  %1814 = vmatmul.msk.bf16.vlgmr.msrb.gmra.mxu1 %vm692_vm11, %v833_v62  ;;  %v2068_v46 = vld [vmem:[%s2713_s11] ss:$0 sm:$0xff] }
 0x4c8   : > { %v898_v3 = vsel %vm726_vm12, %v893_v2, 0  ;;  %1020 = vmatpush.bf16.msra.mxu1 %v1983_v29 }
 0x4c9   : > { %v891_v4 = vpack.c.bf16 %v890_v1, %v890_v1  ;;  %907 = vmatpush.bf16.msra.mxu0 %v898_v3 }
 0x4cc   : > { %1816 = vmatmul.msk.bf16.vlgmr.msra.gmra.mxu0 %vm692_vm11, %v891_v4 }
 0x520   : > { %v739_v5 = vpop.f32.mrf.mxu1 }
 0x521   : > { %743 = vst.msk [vmem:[#allocation2] sm:$0xff] %vm692_vm11, %v739_v5 }
 0x528   : > { %v741_v6 = vpop.f32.mrf.mxu1 }
 0x538   : > { %v793_v7 = vpop.f32.mrf.mxu0 }
 0x539   : > { %798 = vrot.lane.b32.xlu0 %v793_v7, %s2735_s19  ;;  %s2761_s19 = smov 64  }
 0x540   : > { %v795_v9 = vpop.f32.mrf.mxu0 }
 0x541   : > { %v2070_v9 = vld [vmem:[%s2717_s15] ss:$0 sm:$0xff] }
 0x544   : > { %v851_v10 = vpop.f32.mrf.mxu1 }
 0x545   : > { %856 = vrot.lane.b32.xlu1 %v851_v10, %s2734_s29  ;;  %s2758_s29 = smov 104  }
 0x549   : > { %v909_v11 = vpop.f32.mrf.mxu0 }
 0x54a   : > { %914 = vrot.lane.b32.xlu2 %v909_v11, %s2733_s28  ;;  %s2752_s28 = smov 96  }
 0x54c   : > { %v853_v12 = vpop.f32.mrf.mxu1 }
 0x551   : > { %v911_v13 = vpop.f32.mrf.mxu0 }
 0x5a4   : > { %v915_v19 = vpop.permute.xlu2 %914 }
 0x5ab   : > { %v799_v17 = vpop.permute.xlu0 %798 }
 0x5ac   : > { %802 = vst.msk [vmem:[#allocation2] sm:$0xff] %vm801_vm13, %v799_v17 }
 0x5b7   : > { %v857_v18 = vpop.permute.xlu1 %856 }
 0x5b8   : > { %860 = vst.msk [vmem:[#allocation2] sm:$0xff] %vm859_vm14, %v857_v18 }
 0x5b9   : > { %918 = vst.msk [vmem:[#allocation2] sm:$0xff] %vm917_vm15, %v915_v19 }
 0x5c0   : > { %v919_v20 = vld [vmem:[#allocation2] sm:$0xff] }
 0x5c1   : > { %v920_v21 = vpack.c.bf16 %v919_v20, %v919_v20 }
 0x5c3   : > { %1825 = vmatmul.msk.bf16.vlgmr.msra.gmra.mxu3 %vm525_vm0, %v920_v21  ;;  %v1993_v21 = vld [vmem:[%s2706_s4 + $0x18] sm:$0xff] }
 0x5c4   : > { %1251 = vmatpush.msra.mxu3 %v2371_v16  ;;  %1185 = vmatpush.bf16.msrb.mxu0 %v1993_v21 }
 0x5c6   : > { %1252 = vmatpush.msra.mxu3 %v2385_v33 }
 0x5c8   : > { %1253 = vmatpush.msra.mxu3 %v2391_v34 }
 0x5ca   : > { %1254 = vmatpush.msra.mxu3 %v2396_v35 }
 0x646   : > { %v953_v23 = vpop.f32.mrf.mxu3 }
 0x647   : > { %v954_v24 = vadd.f32 %v2066_v22, %v953_v23  ;;  %v1992_v22 = vld [vmem:[%s2706_s4 + $0x10] sm:$0xff] }
 0x648   : > { %1186 = vmatpush.bf16.msrb.mxu0 %v1992_v22 }
 0x649   : > { %v2481_v25 = vadd.f32 %v954_v24, %v2353_v0  ;;  %v1982_v0 = vld [vmem:[%s2714_s12] sm:$0xff] }
 0x64a   : > { %1021 = vmatpush.bf16.msra.mxu1 %v1982_v0 }
 0x64b   : > { %v960_v26 = vsel %vm525_vm0, %v2481_v25, 0.0 }
 0x64c   : > { %961 = vadd.xlane.f32.xlu0 %v960_v26 }
 0x64e   : > { %v955_v16 = vpop.f32.mrf.mxu3 }
 0x6bf   : > { %v962_v27 = vpop.xlane.xlu0 %961 }
 0x6c0   : > { %v963_v33 = vmul.f32 %v962_v27, %v2357_v8 }
 0x6c2   : > { %v964_v34 = vsub.f32 %v2481_v25, %v963_v33 }
 0x6c4   : > { %v965_v35 = vmul.f32 %v964_v34, %v964_v34 }
 0x6c6   : > { %v966_v28 = vsel %vm525_vm0, %v965_v35, 0.0 }
 0x6c7   : > { %967 = vadd.xlane.f32.xlu2 %v966_v28  ;;  %v2071_v28 = vld [vmem:[%s2750_s2 + $0x1] ss:$0 sm:$0xff] }
 0x73a   : > { %v968_v31 = vpop.xlane.xlu2 %967 }
 0x73b   : > { %v969_v32 = vmul.f32 %v968_v31, %v2357_v8 }
 0x73d   : > { %v970_v36 = vadd.f32 1e-05, %v969_v32 }
 0x73f   : > { %2105 = vrsqrt.f32 %v970_v36  ;;  %vm977_vm2 = vweird.f32 %v970_v36 }
 0x745   : > { %v2106_v37 = vpop.eup %2105 }
 0x746   : > { %v972_v38 = vmul.f32 %v2106_v37, %v970_v36  ;;  %vm978_vm1 = vweird.f32 %v2106_v37 }
 0x747   : > { %vm979_vm3 = vmor %vm977_vm2, %vm978_vm1 }
 0x748   : > { %v973_v39 = vmul.f32 %v2106_v37, %v972_v38 }
 0x74a   : > { %v974_v40 = vmul.f32 0.5, %v973_v39 }
 0x74c   : > { %v975_v41 = vsub.f32 1.5, %v974_v40 }
 0x74e   : > { %v976_v42 = vmul.f32 %v2106_v37, %v975_v41 }
 0x750   : > { %v980_v44 = vsel %vm979_vm3, %v2106_v37, %v976_v42  ;;  %v2073_v37 = vld [vmem:[%s2707_s5 + $0x1] ss:$0 sm:$0xff] }
 0x751   : > { %v981_v45 = vmul.f32 %v980_v44, %v964_v34 }
 0x753   : > { %v985_v47 = vmul.f32 %v2067_v43, %v981_v45  ;;  %v2074_v43 = vld [vmem:[%s2709_s7 + $0x1] ss:$0 sm:$0xff] }
 0x755   : > { %v989_v48 = vadd.f32 %v2068_v46, %v985_v47 }
 0x757   : > { %v990_v49 = vpack.c.bf16 %v989_v48, %v989_v48 }
 0x759   : > { %1834 = vmatmul.msk.bf16.vlgmr.msra.gmra.mxu1 %vm525_vm0, %v990_v49 }
 0x7d6   : > { %v1023_v58 = vpop.f32.mrf.mxu1 }
 0x7d7   : > { %v1024_v59 = vadd.f32 %v2069_v57, %v1023_v58 }
 0x7d9   : > { %v1027_v60 = vmul.f32 %v1024_v59, %v1024_v59 }
 0x7db   : > { %v1028_v61 = vmul.f32 %v1027_v60, %v1024_v59 }
 0x7dd   : > { %v1029_v62 = vmul.f32 0.044715, %v1028_v61 }
 0x7de   : > { %v1025_v63 = vpop.f32.mrf.mxu1 }
 0x7df   : > { %v1030_v1 = vadd.f32 %v1029_v62, %v1024_v59 }
 0x7e1   : > { %v1031_v2 = vmul.f32 0.7978846, %v1030_v1 }
 0x7e3   : > { %2107 = vtanh.f32 %v1031_v2 }
 0x7e9   : > { %v2108_v3 = vpop.eup %2107 }
 0x7ea   : > { %v1033_v4 = vadd.f32 1.0, %v2108_v3 }
 0x7ec   : > { %v1034_v5 = vmul.f32 0.5, %v1033_v4 }
 0x7ee   : > { %v1035_v6 = vmul.f32 %v1034_v5, %v1024_v59  ;;  %v2075_v5 = vld [vmem:[%s2708_s6 + $0x1] ss:$0 sm:$0xff] }
 0x7f0   : > { %v1036_v7 = vpack.c.bf16 %v1035_v6, %v1035_v6 }
 0x7f2   : > { %1113 = vmatmul.bf16.vlgmr.msra.gmra.mxu2 %v1036_v7 }
 0x875   : > { %v1114_v10 = vpop.f32.mrf.mxu2 }
 0x876   : > { %v1115_v11 = vadd.f32 %v2070_v9, %v1114_v10 }
 0x878   : > { %v2533_v12 = vadd.f32 %v1115_v11, %v2481_v25 }
 0x87a   : > { %v1123_v13 = vsel %vm525_vm0, %v2533_v12, 0.0 }
 0x87b   : > { %1124 = vadd.xlane.f32.xlu1 %v1123_v13 }
 0x87d   : > { %v1116_v14 = vpop.f32.mrf.mxu2 }
 0x894   : > { %1276 = vrot.lane.b32.xlu1 %v2074_v43, %s2753_s18 }
 0x8ee   : > { %v1125_v15 = vpop.xlane.xlu1 %1124 }
 0x8ef   : > { %v1126_v17 = vmul.f32 %v1125_v15, %v2357_v8 }
 0x8f1   : > { %v1127_v18 = vsub.f32 %v2533_v12, %v1126_v17 }
 0x8f3   : > { %v1128_v19 = vmul.f32 %v1127_v18, %v1127_v18 }
 0x8f5   : > { %v1129_v20 = vsel %vm525_vm0, %v1128_v19, 0.0 }
 0x8f6   : > { %1130 = vadd.xlane.f32.xlu0 %v1129_v20 }
 0x906   : > { %v1277_v62 = vpop.permute.xlu1 %1276 }
 0x969   : > { %v1131_v23 = vpop.xlane.xlu0 %1130 }
 0x96a   : > { %v1132_v24 = vmul.f32 %v1131_v23, %v2357_v8 }
 0x96c   : > { %v1133_v25 = vadd.f32 1e-05, %v1132_v24 }
 0x96e   : > { %2109 = vrsqrt.f32 %v1133_v25  ;;  %vm1140_vm5 = vweird.f32 %v1133_v25 }
 0x974   : > { %v2110_v26 = vpop.eup %2109 }
 0x975   : > { %v1135_v16 = vmul.f32 %v2110_v26, %v1133_v25  ;;  %vm1141_vm4 = vweird.f32 %v2110_v26 }
 0x976   : > { %vm1142_vm6 = vmor %vm1140_vm5, %vm1141_vm4 }
 0x977   : > { %v1136_v27 = vmul.f32 %v2110_v26, %v1135_v16 }
 0x979   : > { %v1137_v33 = vmul.f32 0.5, %v1136_v27 }
 0x97b   : > { %v1138_v34 = vsub.f32 1.5, %v1137_v33 }
 0x97d   : > { %v1139_v35 = vmul.f32 %v2110_v26, %v1138_v34 }
 0x97f   : > { %v1143_v29 = vsel %vm1142_vm6, %v2110_v26, %v1139_v35 }
 0x980   : > { %v1144_v0 = vmul.f32 %v1143_v29, %v1127_v18 }
 0x982   : > { %v1148_v31 = vmul.f32 %v2071_v28, %v1144_v0 }
 0x984   : > { %v1152_v32 = vadd.f32 %v2072_v30, %v1148_v31 }
 0x986   : > { %v1153_v36 = vpack.c.bf16 %v1152_v32, %v1152_v32 }
 0x988   : > { %1882 = vmatmul.msk.bf16.vlgmr.msrb.gmra.mxu0 %vm525_vm0, %v1153_v36 }
 0xa05   : > { %v1188_v38 = vpop.f32.mrf.mxu0 }
 0xa06   : > { %v1189_v39 = vadd.f32 %v2073_v37, %v1188_v38 }
 0xa08   : > { %v1194_v40 = vmul.f32 %v1189_v39, %v1189_v39  ;;  %v1282_v9 = vpack.c.bf16 %v1189_v39, %v1189_v39 }
 0xa0a   : > { %1235 = vrot.lane.b32.xlu2 %v1194_v40, %s2752_s28  ;;  %1884 = vmatmul.msk.f32.vlgmr.msrb.gmra.mxu3 %vm525_vm0, %v1194_v40 }
 0xa0d   : > { %v1190_v41 = vpop.f32.mrf.mxu0 }
 0xa64   : > { %v1236_v42 = vpop.permute.xlu2 %1235 }
 0xa65   : > { %1886 = vmatmul.msk.f32.vlgmr.msra.gmra.mxu3 %vm525_vm0, %v1236_v42 }
 0xa8d   : > { %v1215_v44 = vpop.f32.mrf.mxu3 }
 0xa8e   : > { %v1216_v54 = vadd.f32 1e-06, %v1215_v44 }
 0xa90   : > { %vm1224_vm1 = vweird.f32 %v1216_v54 }
 0xae8   : > { %v1256_v45 = vpop.f32.mrf.mxu3 }
 0xae9   : > { %v1257_v46 = vadd.f32 1e-06, %v1256_v45 }
 0xaeb   : > { %2111 = vrsqrt.f32 %v1257_v46  ;;  %vm1265_vm8 = vweird.f32 %v1257_v46 }
 0xaec   : > { %2113 = vrsqrt.f32 %v1216_v54 }
 0xaf1   : > { %v2112_v47 = vpop.eup %2111 }
 0xaf2   : > { %v1260_v48 = vmul.f32 %v2112_v47, %v1257_v46  ;;  %vm1266_vm7 = vweird.f32 %v2112_v47  ;;  %v2114_v55 = vpop.eup %2113 }
 0xaf3   : > { %vm1267_vm9 = vmor %vm1265_vm8, %vm1266_vm7  ;;  %v1219_v56 = vmul.f32 %v2114_v55, %v1216_v54  ;;  %vm1225_vm10 = vweird.f32 %v2114_v55 }
 0xaf4   : > { %v1261_v49 = vmul.f32 %v2112_v47, %v1260_v48  ;;  %vm1226_vm2 = vmor %vm1224_vm1, %vm1225_vm10 }
 0xaf5   : > { %v1220_v57 = vmul.f32 %v2114_v55, %v1219_v56 }
 0xaf6   : > { %v1262_v50 = vmul.f32 0.5, %v1261_v49 }
 0xaf7   : > { %v1221_v58 = vmul.f32 0.5, %v1220_v57 }
 0xaf8   : > { %v1263_v51 = vsub.f32 1.5, %v1262_v50 }
 0xaf9   : > { %v1222_v59 = vsub.f32 1.5, %v1221_v58 }
 0xafa   : > { %v1264_v52 = vmul.f32 %v2112_v47, %v1263_v51 }
 0xafb   : > { %v1223_v60 = vmul.f32 %v2114_v55, %v1222_v59 }
 0xafc   : > { %v1268_v53 = vsel %vm1267_vm9, %v2112_v47, %v1264_v52 }
 0xafd   : > { %1270 = vrot.lane.b32.xlu0 %v1268_v53, %s2753_s18  ;;  %v1227_v1 = vsel %vm1226_vm2, %v2114_v55, %v1223_v60  ;;  %s2760_s18 = smov 56  }
 0xafe   : > { %v1228_v4 = vmul.f32 %v1227_v1, %v1189_v39 }
 0xb00   : > { %v1232_v6 = vmul.f32 %v2075_v5, %v1228_v4 }
 0xb02   : > { %v1280_v7 = vpack.c.bf16 %v1232_v6, %v1232_v6 }
 0xb6f   : > { %v1271_v61 = vpop.permute.xlu0 %1270 }
 0xb70   : > { %v1273_v63 = vmul.f32 %v1271_v61, %v1189_v39 }
 0xb72   : > { %v1279_v2 = vmul.f32 %v1277_v62, %v1273_v63 }
 0xb74   : > { %v1281_v3 = vpack.c.bf16 %v1279_v2, %v1279_v2 }
 0xb76   : > { %1453 = vrot.lane.b32.xlu1 %v1281_v3, %s2754_s1  ;;  %1339 = vrot.lane.b32.xlu2 %v1281_v3, %s2755_s26  ;;  %s2764_s1 = smov 8   ;;  %s2765_s26 = smov 16  }
 0xb77   : > { %1284 = vrot.lane.b32.xlu0 %v1281_v3, %s2752_s28  ;;  %s2762_s28 = smov 40  }
 0xb7e   : > { %1396 = vrot.lane.b32.xlu2 %v1281_v3, %s2756_s23  ;;  %s2766_s23 = smov 24  }
 0xb7f   : > { %1337 = vrot.lane.b32.xlu0 %v1280_v7, %s2757_s27 }
 0xb86   : > { %1451 = vrot.lane.b32.xlu2 %v1280_v7, %s2758_s29 }
 0xb87   : > { %1394 = vrot.lane.b32.xlu0 %v1280_v7, %s2759_s30  ;;  %s510_s30 = sand.u32 1, %s2189_s22  }
 0xb8e   : > { %1368 = vrot.lane.b32.xlu2 %v1282_v9, %s2760_s18  ;;  %s1796_s18 = sshll.u32 %s510_s30, 3 }
 0xb8f   : > { %s512_s27 = scalar_lea.vmem [#allocation3], %s1796_s18  ;;  %s2155_s18 = scalar_lea.hbm %s2718_s16, 16 }
 0xb90   : > { %s1730_s29 = sshll.u32 %s512_s27, 4  ;;  %s1731_s29 = int_to_ptr.vmem [resolvable:$true] %s1730_s29 }
 0xb96   : > { %1314 = vrot.lane.b32.xlu2 %v1282_v9, %s2761_s19  ;;  %s1975_s19 = sshll.u32 %s2321_s25, 3  ;;  %s1718_s25 = scalar_lea.sflag [#allocation4], %s510_s30 }
 0xbd0   : > { %v1340_v10 = vpop.permute.xlu2 %1339 }
 0xbd1   : > { %v1345_v11 = vsel %vm692_vm11, %v1340_v10, 0 }
 0xbd2   : > { %1354 = vmatpush.bf16.xpose.msrb.mxu1 %v1345_v11 }
 0xbd8   : > { %v1397_v13 = vpop.permute.xlu2 %1396 }
 0xbd9   : > { %v1402_v22 = vsel %vm692_vm11, %v1397_v13, 0  ;;  %v1995_v13 = vld [vmem:[%s2710_s8 + $0x18] sm:$0xff] }
 0xbe0   : > { %v1452_v14 = vpop.permute.xlu2 %1451 }
 0xbe8   : > { %v1454_v15 = vpop.permute.xlu1 %1453  ;;  %v1369_v17 = vpop.permute.xlu2 %1368 }
 0xbe9   : > { %v1459_v18 = vsel %vm692_vm11, %v1454_v15, 0  ;;  %v1374_v19 = vsel %vm726_vm12, %v1369_v17, 0  ;;  %v1285_v20 = vpop.permute.xlu0 %1284 }
 0xbea   : > { %v1290_v21 = vsel %vm692_vm11, %v1285_v20, 0  ;;  %1383 = vmatpush.bf16.msrb.mxu2 %v1374_v19  ;;  %1468 = vmatpush.bf16.xpose.msra.mxu1 %v1459_v18  ;;  %v2076_v20 = vld [vmem:[%s2711_s9 + $0x1] ss:$0 sm:$0xff] }
 0xbeb   : > { %1299 = vmatpush.bf16.xpose.msrb.mxu3 %v1290_v21 }
 0xbf0   : > { %v1315_v23 = vpop.permute.xlu2 %1314 }
 0xbf1   : > { %v1320_v24 = vsel %vm726_vm12, %v1315_v23, 0  ;;  %v1338_v25 = vpop.permute.xlu0 %1337 }
 0xbf2   : > { %1887 = vmatmul.msk.bf16.vlgmr.msrb.gmra.mxu3 %vm692_vm11, %v1280_v7  ;;  %1889 = vmatmul.msk.bf16.vlgmr.msrb.gmra.mxu1 %vm692_vm11, %v1338_v25 }
 0xbf3   : > { %1411 = vmatpush.bf16.xpose.msra.mxu3 %v1402_v22  ;;  %1329 = vmatpush.bf16.msra.mxu0 %v1320_v24 }
 0xbf9   : > { %v1395_v26 = vpop.permute.xlu0 %1394 }
 0xbfb   : > { %1541 = vmatpush.bf16.msrb.mxu3 %v1995_v13 }
 0xc02   : > { %1891 = vmatmul.msk.bf16.vlgmr.msra.gmra.mxu3 %vm692_vm11, %v1395_v26  ;;  %1893 = vmatmul.msk.bf16.vlgmr.msra.gmra.mxu1 %vm692_vm11, %v1452_v14  ;;  %v1994_v14 = vld [vmem:[%s2710_s8 + $0x10] sm:$0xff] }
 0xc03   : > { %1542 = vmatpush.bf16.msrb.mxu3 %v1994_v14 }
 0xc6f   : > { %v1356_v16 = vpop.f32.mrf.mxu1 }
 0xc70   : > { %v1360_v27 = vmul.f32 1.442695, %v1356_v16 }
 0xc72   : > { %2115 = vpow2.f32 %v1360_v27 }
 0xc75   : > { %v1301_v33 = vpop.f32.mrf.mxu3 }
 0xc76   : > { %v1305_v34 = vmul.f32 1.442695, %v1301_v33 }
 0xc77   : > { %v1358_v35 = vpop.f32.mrf.mxu1 }
 0xc78   : > { %v2116_v28 = vpop.eup %2115  ;;  %2117 = vpow2.f32 %v1305_v34  ;;  %v1997_v35 = vld [vmem:[%s2714_s12 + $0x18] sm:$0xff] }
 0xc79   : > { %v1362_v29 = vsel %vm692_vm11, %v2116_v28, 0.0 }
 0xc7a   : > { %1363 = vadd.xlane.f32.xlu1 %v1362_v29 }
 0xc7d   : > { %v1303_v0 = vpop.f32.mrf.mxu3 }
 0xc7e   : > { %v2118_v30 = vpop.eup %2117 }
 0xc7f   : > { %v1470_v31 = vpop.f32.mrf.mxu1  ;;  %v1307_v32 = vsel %vm692_vm11, %v2118_v30, 0.0 }
 0xc80   : > { %v1474_v36 = vmul.f32 1.442695, %v1470_v31  ;;  %1308 = vadd.xlane.f32.xlu0 %v1307_v32 }
 0xc82   : > { %2119 = vpow2.f32 %v1474_v36 }
 0xc85   : > { %v1413_v37 = vpop.f32.mrf.mxu3 }
 0xc86   : > { %v1417_v38 = vmul.f32 1.442695, %v1413_v37 }
 0xc87   : > { %v1472_v39 = vpop.f32.mrf.mxu1 }
 0xc88   : > { %v2120_v40 = vpop.eup %2119  ;;  %2121 = vpow2.f32 %v1417_v38 }
 0xc89   : > { %v1476_v41 = vsel %vm692_vm11, %v2120_v40, 0.0 }
 0xc8a   : > { %1477 = vadd.xlane.f32.xlu2 %v1476_v41 }
 0xc8d   : > { %v1415_v42 = vpop.f32.mrf.mxu3 }
 0xc8e   : > { %v2122_v43 = vpop.eup %2121 }
 0xc8f   : > { %v1419_v44 = vsel %vm692_vm11, %v2122_v43, 0.0 }
 0xc90   : > { %1420 = vadd.xlane.f32.xlu1 %v1419_v44 }
 0xc94   : > { %1482 = vrot.lane.b32.xlu0 %v1282_v9, %s2762_s28 }
 0xca9   : > { %1425 = vrot.lane.b32.xlu1 %v1282_v9, %s2763_s20 }
 0xced   : > { %v1364_v45 = vpop.xlane.xlu1 %1363 }
 0xcee   : > { %2123 = vrcp.f32 %v1364_v45 }
 0xcf3   : > { %v1309_v46 = vpop.xlane.xlu0 %1308 }
 0xcf4   : > { %v2124_v47 = vpop.eup %2123  ;;  %2125 = vrcp.f32 %v1309_v46  ;;  %v2004_v46 = vld [vmem:[%s2716_s14 + $0x70] sm:$0xff] }
 0xcf5   : > { %v1366_v48 = vmul.f32 %v2124_v47, %v2116_v28  ;;  %v2005_v28 = vld [vmem:[%s2716_s14 + $0x78] sm:$0xff]  ;;  %v2003_v47 = vld [vmem:[%s2716_s14 + $0x68] sm:$0xff] }
 0xcf6   : > { %1702 = vmatpush.bf16.msrb.mxu1 %v2005_v28 }
 0xcf7   : > { %v1367_v49 = vpack.c.bf16 %v1366_v48, %v1366_v48  ;;  %v2002_v48 = vld [vmem:[%s2716_s14 + $0x60] sm:$0xff] }
 0xcf9   : > { %1890 = vmatmul.msk.bf16.vlgmr.msrb.gmra.mxu2 %vm692_vm11, %v1367_v49  ;;  %v2001_v49 = vld [vmem:[%s2716_s14 + $0x58] sm:$0xff] }
 0xcfa   : > { %v2126_v50 = vpop.eup %2125  ;;  %1703 = vmatpush.bf16.msrb.mxu1 %v2004_v46 }
 0xcfb   : > { %v1311_v51 = vmul.f32 %v2126_v50, %v2118_v30  ;;  %v2000_v50 = vld [vmem:[%s2716_s14 + $0x50] sm:$0xff] }
 0xcfd   : > { %v1312_v52 = vpack.c.bf16 %v1311_v51, %v1311_v51  ;;  %v1478_v53 = vpop.xlane.xlu2 %1477  ;;  %v1999_v51 = vld [vmem:[%s2716_s14 + $0x48] sm:$0xff] }
 0xcfe   : > { %2127 = vrcp.f32 %v1478_v53  ;;  %1704 = vmatpush.bf16.msrb.mxu1 %v2003_v47  ;;  %v2079_v53 = vld [vmem:[%s2715_s13 + $0x1] ss:$0 sm:$0xff] }
 0xcff   : > { %1888 = vmatmul.msk.bf16.vlgmr.msra.gmra.mxu0 %vm692_vm11, %v1312_v52  ;;  %v1998_v52 = vld [vmem:[%s2716_s14 + $0x40] sm:$0xff] }
 0xd02   : > { %1705 = vmatpush.bf16.msrb.mxu1 %v2002_v48 }
 0xd03   : > { %v1421_v59 = vpop.xlane.xlu1 %1420 }
 0xd04   : > { %v2128_v54 = vpop.eup %2127  ;;  %2129 = vrcp.f32 %v1421_v59 }
 0xd05   : > { %v1480_v55 = vmul.f32 %v2128_v54, %v2120_v40  ;;  %v2077_v40 = vld [vmem:[%s2712_s10 + $0x1] ss:$0 sm:$0xff] }
 0xd06   : > { %v1483_v56 = vpop.permute.xlu0 %1482  ;;  %1706 = vmatpush.bf16.msrb.mxu1 %v2001_v49 }
 0xd07   : > { %v1488_v57 = vsel %vm726_vm12, %v1483_v56, 0  ;;  %v1481_v58 = vpack.c.bf16 %v1480_v55, %v1480_v55 }
 0xd08   : > { %1497 = vmatpush.bf16.msra.mxu2 %v1488_v57 }
 0xd0a   : > { %v2130_v60 = vpop.eup %2129  ;;  %1707 = vmatpush.bf16.msrb.mxu1 %v2000_v50 }
 0xd0b   : > { %1894 = vmatmul.msk.bf16.vlgmr.msra.gmra.mxu2 %vm692_vm11, %v1481_v58  ;;  %v1423_v61 = vmul.f32 %v2130_v60, %v2122_v43 }
 0xd0d   : > { %v1424_v1 = vpack.c.bf16 %v1423_v61, %v1423_v61 }
 0xd0e   : > { %1708 = vmatpush.bf16.msrb.mxu1 %v1999_v51 }
 0xd12   : > { %1709 = vmatpush.bf16.msrb.mxu1 %v1998_v52 }
 0xd1b   : > { %v1426_v62 = vpop.permute.xlu1 %1425 }
 0xd1c   : > { %v1431_v63 = vsel %vm726_vm12, %v1426_v62, 0 }
 0xd1d   : > { %1440 = vmatpush.bf16.msrb.mxu0 %v1431_v63 }
 0xd20   : > { %1892 = vmatmul.msk.bf16.vlgmr.msrb.gmra.mxu0 %vm692_vm11, %v1424_v1 }
 0xd21   : > { %1615 = vmatpush.bf16.msra.mxu0 %v1997_v35 }
 0xd7c   : > { %v1331_v2 = vpop.f32.mrf.mxu0  ;;  %v1385_v3 = vpop.f32.mrf.mxu2 }
 0xd7d   : > { %1335 = vst.msk [vmem:[#allocation2] sm:$0xff] %vm692_vm11, %v1331_v2  ;;  %1390 = vrot.lane.b32.xlu2 %v1385_v3, %s2764_s1 }
 0xd84   : > { %v1333_v4 = vpop.f32.mrf.mxu0  ;;  %v1387_v5 = vpop.f32.mrf.mxu2 }
 0xd85   : > { %v2080_v4 = vld [vmem:[%s2717_s15 + $0x1] ss:$0 sm:$0xff] }
 0xd8e   : > { %v1499_v6 = vpop.f32.mrf.mxu2 }
 0xd96   : > { %v1501_v7 = vpop.f32.mrf.mxu2 }
 0xd9d   : > { %v1442_v9 = vpop.f32.mrf.mxu0 }
 0xd9e   : > { %1447 = vrot.lane.b32.xlu0 %v1442_v9, %s2765_s26 }
 0xda5   : > { %v1444_v10 = vpop.f32.mrf.mxu0 }
 0xda6   : > { %1504 = vrot.lane.b32.xlu0 %v1499_v6, %s2766_s23  ;;  %s1728_s23 = scalar_lea.hbm %s2718_s16, %s1975_s19 }
 0xda7   : > { %s1732_s2 = sshll.u32 %s1728_s23, 4  ;;  %s1733_s2 = int_to_ptr.hbm [resolvable:$true] %s1732_s2 }
 0xda8   : > { %s2149_s3 = sshra.s32 %s1733_s2, 4  ;;  %s2150_s3 = int_to_ptr.hbm [resolvable:$true] %s2149_s3 }
 0xda9   : > { %s2151_s28 = scalar_lea.hbm %s2150_s3, 8  ;;  %p2156_p0 = scmp.lt.s32.totalorder %s2150_s3, %s2718_s16 }
 0xdaa   : > { %p2152_p11 = scmp.ne.s32.totalorder %s2150_s3, %s2151_s28  ;;  %p2157_p1 = scmp.lt.s32.totalorder %s2155_s18, %s2151_s28 }
 0xdac   : > { %p2153_p12 = pnand %p2152_p11, %p2338_p5  ;;  %p2158_p2 = por %p2157_p1, %p2156_p0 }
 0xdae   : > { %p2154_p13 = pneg %p2153_p12 }
 0xdb0   : > { %p2159_p3 = pnand %p2158_p2, %p2154_p13 }
 0xdd7   : > { %v1391_v11 = vpop.permute.xlu2 %1390 }
 0xdd8   : > { %1393 = vst.msk [vmem:[#allocation2] sm:$0xff] %vm801_vm13, %v1391_v11 }
 0xe10   : > { %v1448_v15 = vpop.permute.xlu0 %1447 }
 0xe11   : > { %1450 = vst.msk [vmem:[#allocation2] sm:$0xff] %vm859_vm14, %v1448_v15 }
 0xe18   : > { %v1505_v17 = vpop.permute.xlu0 %1504 }
 0xe19   : > { %1507 = vst.msk [vmem:[#allocation2] sm:$0xff] %vm917_vm15, %v1505_v17 }
 0xe20   : > { %v1508_v18 = vld [vmem:[#allocation2] sm:$0xff] }
 0xe21   : > { %v1509_v19 = vpack.c.bf16 %v1508_v18, %v1508_v18 }
 0xe23   : > { %1908 = vmatmul.msk.bf16.vlgmr.msrb.gmra.mxu3 %vm525_vm0, %v1509_v19 }
 0xea6   : > { %v1544_v21 = vpop.f32.mrf.mxu3 }
 0xea7   : > { %v1545_v22 = vadd.f32 %v2076_v20, %v1544_v21 }
 0xea9   : > { %v2617_v23 = vadd.f32 %v1545_v22, %v2533_v12  ;;  %v1996_v12 = vld [vmem:[%s2714_s12 + $0x10] sm:$0xff] }
 0xeaa   : > { %1616 = vmatpush.bf16.msra.mxu0 %v1996_v12 }
 0xeab   : > { %v1553_v24 = vsel %vm525_vm0, %v2617_v23, 0.0 }
 0xeac   : > { %1554 = vadd.xlane.f32.xlu1 %v1553_v24 }
 0xeae   : > { %v1546_v25 = vpop.f32.mrf.mxu3 }
 0xf1f   : > { %v1555_v26 = vpop.xlane.xlu1 %1554 }
 0xf20   : > { %v1556_v16 = vmul.f32 %v1555_v26, %v2357_v8 }
 0xf22   : > { %v1557_v27 = vsub.f32 %v2617_v23, %v1556_v16 }
 0xf24   : > { %v1558_v33 = vmul.f32 %v1557_v27, %v1557_v27 }
 0xf26   : > { %v1559_v34 = vsel %vm525_vm0, %v1558_v33, 0.0 }
 0xf27   : > { %1560 = vadd.xlane.f32.xlu0 %v1559_v34 }
 0xf9a   : > { %v1561_v29 = vpop.xlane.xlu0 %1560 }
 0xf9b   : > { %v1562_v0 = vmul.f32 %v1561_v29, %v2357_v8  ;;  %v2078_v8 = vld [vmem:[%s2713_s11 + $0x1] ss:$0 sm:$0xff] }
 0xf9d   : > { %v1563_v30 = vadd.f32 1e-05, %v1562_v0 }
 0xf9f   : > { %2131 = vrsqrt.f32 %v1563_v30  ;;  %vm1570_vm12 = vweird.f32 %v1563_v30 }
 0xfa5   : > { %v2132_v31 = vpop.eup %2131 }
 0xfa6   : > { %v1565_v32 = vmul.f32 %v2132_v31, %v1563_v30  ;;  %vm1571_vm11 = vweird.f32 %v2132_v31 }
 0xfa7   : > { %vm1572_vm13 = vmor %vm1570_vm12, %vm1571_vm11 }
 0xfa8   : > { %v1566_v36 = vmul.f32 %v2132_v31, %v1565_v32 }
 0xfaa   : > { %v1567_v37 = vmul.f32 0.5, %v1566_v36 }
 0xfac   : > { %v1568_v38 = vsub.f32 1.5, %v1567_v37 }
 0xfae   : > { %v1569_v39 = vmul.f32 %v2132_v31, %v1568_v38 }
 0xfb0   : > { %v1573_v41 = vsel %vm1572_vm13, %v2132_v31, %v1569_v39 }
 0xfb1   : > { %v1574_v42 = vmul.f32 %v1573_v41, %v1557_v27 }
 0xfb3   : > { %v1578_v43 = vmul.f32 %v2077_v40, %v1574_v42 }
 0xfb5   : > { %v1582_v44 = vadd.f32 %v2078_v8, %v1578_v43 }
 0xfb7   : > { %v1583_v45 = vpack.c.bf16 %v1582_v44, %v1582_v44 }
 0xfb9   : > { %1924 = vmatmul.msk.bf16.vlgmr.msra.gmra.mxu0 %vm525_vm0, %v1583_v45 }
0x1036   : > { %v1618_v54 = vpop.f32.mrf.mxu0 }
0x1037   : > { %v1619_v55 = vadd.f32 %v2079_v53, %v1618_v54 }
0x1039   : > { %v1622_v56 = vmul.f32 %v1619_v55, %v1619_v55 }
0x103b   : > { %v1623_v57 = vmul.f32 %v1622_v56, %v1619_v55 }
0x103d   : > { %v1624_v58 = vmul.f32 0.044715, %v1623_v57 }
0x103e   : > { %v1620_v59 = vpop.f32.mrf.mxu0 }
0x103f   : > { %v1625_v60 = vadd.f32 %v1624_v58, %v1619_v55 }
0x1041   : > { %v1626_v61 = vmul.f32 0.7978846, %v1625_v60 }
0x1043   : > { %2133 = vtanh.f32 %v1626_v61 }
0x1049   : > { %v2134_v62 = vpop.eup %2133 }
0x104a   : > { %v1628_v63 = vadd.f32 1.0, %v2134_v62 }
0x104c   : > { %v1629_v1 = vmul.f32 0.5, %v1628_v63 }
0x104e   : > { %v1630_v2 = vmul.f32 %v1629_v1, %v1619_v55 }
0x1050   : > { %v1631_v3 = vpack.c.bf16 %v1630_v2, %v1630_v2 }
0x1052   : > { %1710 = vmatmul.bf16.vlgmr.msrb.gmra.mxu1 %v1631_v3 }
0x10cf   : > { %v1711_v5 = vpop.f32.mrf.mxu1 }
0x10d0   : > { %v1712_v6 = vadd.f32 %v2080_v4, %v1711_v5 }
0x10d2   : > { %v1715_v7 = vadd.f32 %v1712_v6, %v2617_v23 }
0x10d4   : > { %1716 = vst.msk [vmem:[%s512_s27] sm:$0xff] %vm525_vm0, %v1715_v7 }
0x10d5   : > { %2162 = shalt.err (!%p2159_p3)
}
0x10d6   : > { %2006 = dma.vmem_to_hbm [thread:$0]  (%p2338_p5), %s1731_s29, 128, %s1733_s2, %s1718_s25  }
0x10d7   : > { %v1713_v9 = vpop.f32.mrf.mxu1 }
0x10d8 PF: > { %p2012_p4 = scmp.ge.s32.totalorder %s2197_s24, 2  ;;  %s1744_s30 = sand.u32 1, %s2185_s21  }
0x10d9   : > { %s1745_s23 = scalar_lea.sflag [#allocation4], %s1744_s30 }
0x10da   : > { %p2009_p7 = pnand %p2012_p4, %p2342_p6 }
0x10dc   : > { %p2010_p8 = pneg %p2009_p7 }
0x10de   : > { %2180 = dma.done.wait (%p2010_p8), %s1745_s23, 128  }
0x10df   : > { %2182 = vsyncadd (%p2010_p8), %s1745_s23, 4294967168  ;;  %s2767_s24 = sld [smem:[#allocation7_spill]]  ;;  %s2770_s21 = smov %s2189_s22 }
0x10e0   : > { %s2768_s3 = sld [smem:[#allocation6_spill]] }
0x10e1   : > { %s2769_s23 = sld [smem:[#allocation8_spill]] }
0x10e5   : > { %p26_p9 = scmp.ge.s32.totalorder %s2767_s24, 4  }
0x10e6   : > { %s2771_s22 = smov %s2768_s3 }
0x10e7   :  { %28 = sbr.rel (!%p26_p9) target bundleno = 8 (0x8), region = 133 }
0x10ec   :  { %1751 = vsyncpa [#allocation4], 1 }
0x10ed   :  { %1753 = vsyncpa [#allocation4 + $0x1], 1 }

</bundles_post_ra>
